<compile_context>
chip_gen: v7x
topology: tpu7x:2x2x1
jax: 0.10.0
libtpu: 0.0.40
codegen_flags: <defaults>
</compile_context>

<pallas_src>
import functools

import jax
import jax.numpy as jnp
from jax import lax
from jax.experimental import pallas as pl
from jax.experimental.pallas import tpu as pltpu

architecture_config = [
    (7, 64, 2, 3), (2, 2), (3, 192, 1, 1), (2, 2), (1, 128, 1, 0),
    (3, 256, 1, 1), (1, 256, 1, 0), (3, 512, 1, 1), (2, 2),
    [(1, 256, 1, 0), (3, 512, 1, 1), 4], (1, 512, 1, 0), (3, 1024, 1, 1),
    (2, 2), [(1, 512, 1, 0), (3, 1024, 1, 1), 2], (3, 1024, 1, 1),
    (3, 1024, 2, 1), (3, 1024, 1, 1), (3, 1024, 1, 1),
]

BN_EPS = 1e-5
NEG_SLOPE = 0.1


def _round_up(x, m):
  return (x + m - 1) // m * m


@functools.lru_cache(maxsize=None)
def _vmem_cap():
  try:
    return int(pltpu.get_tpu_info().vmem_capacity_bytes)
  except Exception:
    return 64 * 1024 * 1024


@functools.lru_cache(maxsize=None)
def _device_kind():
  try:
    return jax.devices()[0].device_kind.lower()
  except Exception:
    return ""


def _vmem_limit():
  return min(_vmem_cap() * 3 // 4, 112 * 1024 * 1024)


def _band_budget():
  # v5e/v6e have 128 MiB VMEM -> use big bands; v7x has 64 MiB -> stay modest.
  if _vmem_cap() >= (96 << 20):
    return 20 << 20
  return 6 << 20


def _mxu_tile():
  k = _device_kind()
  if "v5 lite" in k or "v5e" in k or "v5litepod" in k:
    return 128  # v5e MXU is 128 wide
  return 256


def _cparams(*sems):
  return pltpu.CompilerParams(dimension_semantics=tuple(sems),
                              vmem_limit_bytes=_vmem_limit())


def _band(n, row_bytes, budget, row_unit=1):
  """Largest divisor d of n with d*row_bytes <= budget (alignment-aware)."""
  if n * row_bytes <= budget:
    return n
  best = None
  for d in range(1, n):
    if n % d:
      continue
    if row_unit > 1 and (d * row_unit) % 8 != 0:
      continue
    if d * row_bytes <= budget:
      best = d
  return best if best is not None else n


def _chunk(rows, cblk):
  """Row chunk for in-vreg accumulation (acc kept to <= ~16K f32 elements)."""
  target = max(8, 16384 // cblk)
  best = 1
  for d in range(1, rows + 1):
    if rows % d == 0 and d <= target:
      best = d
  return best


def _k_tile(k, cap=2048):
  """Largest divisor of k that is a multiple of 128 and <= cap, else k."""
  best = None
  for d in range(128, min(k, cap) + 1, 128):
    if k % d == 0:
      best = d
  return best if best is not None else k


def _maybe_buffered(shape, index_map, nbuf):
  if nbuf is not None and hasattr(pl, "Buffered"):
    try:
      return pl.BlockSpec(shape, index_map, pipeline_mode=pl.Buffered(nbuf))
    except TypeError:
      pass
  return pl.BlockSpec(shape, index_map)


# ----------------------------------------------------------------------------
# Pallas kernels
# ----------------------------------------------------------------------------
def conv_s1_kernel(x_ref, w_ref, o_ref, stats_ref, *, taps, wp, ow, chunk):
  """Stride-1 conv as KH*KW shifted GEMMs over the flattened padded image.

  x_ref: (1, Hp*Wp + KW-1, Cin) bf16 (whole padded image for one n)
  w_ref: (KH*KW, Cin, cblk) bf16
  o_ref: (1, rbh*Wp, cblk) bf16 (output on the padded-width grid)
  stats_ref: (1, 1, 2, cblk) f32 (partial BN sum / sum-of-squares)

  The f32 accumulator for a row chunk lives in vregs across all taps and each
  output chunk is stored exactly once (no per-tap VMEM scratch RMW).
  """
  rows = o_ref.shape[1]
  cblk = o_ref.shape[2]
  nchunks = rows // chunk
  base = pl.program_id(1) * rows
  ntaps = len(taps)

  def body(i, carry):
    s, ss = carry
    r0 = i * chunk
    if chunk % 8 == 0:
      r0 = pl.multiple_of(r0, chunk)
    xs = x_ref[0, pl.ds(base + r0 + taps[0], chunk), :]
    acc = jnp.dot(xs, w_ref[0], preferred_element_type=jnp.float32)
    for t in range(1, ntaps):
      xs = x_ref[0, pl.ds(base + r0 + taps[t], chunk), :]
      acc = acc + jnp.dot(xs, w_ref[t], preferred_element_type=jnp.float32)
    o_ref[0, pl.ds(r0, chunk), :] = acc.astype(o_ref.dtype)
    if ow == wp:
      accm = acc
    else:
      # Mask the garbage columns produced by the row-wrap out of the stats.
      col = (lax.broadcasted_iota(jnp.int32, (chunk, 1), 0) + r0) % wp
      accm = acc * (col < ow).astype(jnp.float32)
    s = s + jnp.sum(accm, axis=0, keepdims=True)
    ss = ss + jnp.sum(accm * acc, axis=0, keepdims=True)
    return s, ss

  init = (jnp.zeros((1, cblk), jnp.float32),
          jnp.zeros((1, cblk), jnp.float32))
  s, ss = lax.fori_loop(0, nchunks, body, init, unroll=min(nchunks, 8))
  stats_ref[...] = jnp.concatenate([s, ss], axis=0).reshape(stats_ref.shape)


def conv_im2col_kernel(p_ref, w_ref, o_ref, stats_ref, acc_ref):
  """K-tiled im2col GEMM (used only for the two stride-2 convs)."""
  k = pl.program_id(1)

  @pl.when(k == 0)
  def _():
    acc_ref[...] = jnp.zeros_like(acc_ref)

  acc_ref[...] += jnp.dot(p_ref[...], w_ref[...],
                          preferred_element_type=jnp.float32)

  @pl.when(k == pl.num_programs(1) - 1)
  def _():
    acc = acc_ref[...]
    o_ref[...] = acc.astype(o_ref.dtype)
    s = jnp.sum(acc, axis=0, keepdims=True)
    ss = jnp.sum(acc * acc, axis=0, keepdims=True)
    stats_ref[...] = jnp.concatenate([s, ss], axis=0).reshape(stats_ref.shape)


def bn_act_kernel(x_ref, scale_ref, shift_ref, o_ref, *, ow):
  """Folded BatchNorm (y = x*scale + shift) + LeakyReLU, de-pads width."""
  x = x_ref[:, :, :ow, :].astype(jnp.float32)
  y = (x * scale_ref[...].reshape(1, 1, 1, -1)
       + shift_ref[...].reshape(1, 1, 1, -1))
  o_ref[...] = jnp.where(y >= 0.0, y, NEG_SLOPE * y).astype(o_ref.dtype)


def bn_pool_kernel(x_ref, scale_ref, shift_ref, o_ref, *, c, ow2):
  """Fused folded-BN + LeakyReLU + 2x2 max pool (single HBM round trip).

  x block: (1, bh, 2, Wp/2, 2*C) -- H pairs on axis 2, W pairs merged with the
  128-aligned channel axis so loads/stores stay lane dense.
  """
  x = x_ref[...].astype(jnp.float32)
  y = (x * scale_ref[...].reshape(1, 1, 1, 1, -1)
       + shift_ref[...].reshape(1, 1, 1, 1, -1))
  y = jnp.where(y >= 0.0, y, NEG_SLOPE * y)
  h = jnp.maximum(y[:, :, 0], y[:, :, 1])        # (1, bh, Wp/2, 2C)
  w = jnp.maximum(h[..., :c], h[..., c:])        # W-pair max (128-aligned)
  o_ref[...] = w[:, :, :ow2, :].astype(o_ref.dtype)


def fc_kernel(x_ref, w_ref, b_ref, o_ref, acc_ref, *, act):
  """K-tiled, Cout-tiled GEMM + bias (+ optional LeakyReLU)."""
  k = pl.program_id(1)

  @pl.when(k == 0)
  def _():
    acc_ref[...] = jnp.zeros_like(acc_ref)

  acc_ref[...] += jnp.dot(x_ref[...], w_ref[...],
                          preferred_element_type=jnp.float32)

  @pl.when(k == pl.num_programs(1) - 1)
  def _():
    y = acc_ref[...] + b_ref[...]
    if act:
      y = jnp.where(y >= 0.0, y, NEG_SLOPE * y)
    o_ref[...] = y.astype(o_ref.dtype)


# ----------------------------------------------------------------------------
# Conv / BN / LeakyReLU / pool wrappers
# ----------------------------------------------------------------------------
def _conv_s1(x, w3, k, pad):
  """Stride-1 conv; returns flat conv on the (N, OH*Wp, Cpad) grid + stats."""
  N, H, W, Cin = x.shape
  KK, _, Cpad = w3.shape
  Hp, Wp = H + 2 * pad, W + 2 * pad
  OH, OW = Hp - k + 1, Wp - k + 1

  xp = jnp.pad(x, ((0, 0), (pad, pad), (pad, pad), (0, 0)))
  xp = xp.reshape(N, Hp * Wp, Cin)
  if k > 1:  # room for the last tap's row-offset slice
    xp = jnp.pad(xp, ((0, 0), (0, k - 1), (0, 0)))

  cblk = min(Cpad, _mxu_tile())
  rbh = _band(OH, Wp * cblk * 4, _band_budget(), row_unit=Wp)
  rows = rbh * Wp
  n_r, n_c = OH // rbh, Cpad // cblk
  chunk = _chunk(rows, cblk)
  taps = tuple(kh * Wp + kw for kh in range(k) for kw in range(k))

  conv_flat, stats = pl.pallas_call(
      functools.partial(conv_s1_kernel, taps=taps, wp=Wp, ow=OW, chunk=chunk),
      out_shape=(jax.ShapeDtypeStruct((N, OH * Wp, Cpad), jnp.bfloat16),
                 jax.ShapeDtypeStruct((N, n_r, 2, Cpad), jnp.float32)),
      grid_spec=pltpu.PrefetchScalarGridSpec(
          num_scalar_prefetch=0,
          grid=(N, n_r, n_c),
          in_specs=[
              pl.BlockSpec((1, xp.shape[1], Cin), lambda n, r, c: (n, 0, 0)),
              pl.BlockSpec((KK, Cin, cblk), lambda n, r, c: (0, 0, c)),
          ],
          out_specs=(
              pl.BlockSpec((1, rows, cblk), lambda n, r, c: (n, r, c)),
              pl.BlockSpec((1, 1, 2, cblk), lambda n, r, c: (n, r, 0, c)),
          )),
      compiler_params=_cparams("parallel", "parallel", "parallel"),
  )(xp, w3)

  ssum = stats[:, :, 0, :].sum(axis=(0, 1))
  ssq = stats[:, :, 1, :].sum(axis=(0, 1))
  return conv_flat, ssum, ssq, OH, OW, Wp


def _conv_im2col(x, w3, k, stride, pad):
  """Strided conv via im2col GEMM (only the two stride-2 layers)."""
  N, H, W, Cin = x.shape
  KK, _, Cpad = w3.shape
  OH = (H + 2 * pad - k) // stride + 1
  OW = (W + 2 * pad - k) // stride + 1

  xp = jnp.pad(x, ((0, 0), (pad, pad), (pad, pad), (0, 0)))
  cols = [xp[:, kh:kh + stride * (OH - 1) + 1:stride,
             kw:kw + stride * (OW - 1) + 1:stride, :]
          for kh in range(k) for kw in range(k)]
  patches = jnp.concatenate(cols, axis=-1).reshape(N * OH * OW, KK * Cin)
  wmat = w3.reshape(KK * Cin, Cpad)

  M, K = patches.shape
  m_blk = min(512, _round_up(M, 8))
  Mp = _round_up(M, m_blk)
  if Mp != M:
    patches = jnp.pad(patches, ((0, Mp - M), (0, 0)))
  k_blk = _k_tile(K)  # single 147-wide block for the first conv (no K pad)
  n_m, n_k = Mp // m_blk, K // k_blk

  conv_out, stats = pl.pallas_call(
      conv_im2col_kernel,
      out_shape=(jax.ShapeDtypeStruct((Mp, Cpad), jnp.bfloat16),
                 jax.ShapeDtypeStruct((n_m, 2, Cpad), jnp.float32)),
      grid_spec=pltpu.PrefetchScalarGridSpec(
          num_scalar_prefetch=0,
          grid=(n_m, n_k),
          in_specs=[
              pl.BlockSpec((m_blk, k_blk), lambda m, kk: (m, kk)),
              pl.BlockSpec((k_blk, Cpad), lambda m, kk: (kk, 0)),
          ],
          out_specs=(
              pl.BlockSpec((m_blk, Cpad), lambda m, kk: (m, 0)),
              pl.BlockSpec((1, 2, Cpad), lambda m, kk: (m, 0, 0)),
          ),
          scratch_shapes=[pltpu.VMEM((m_blk, Cpad), jnp.float32)]),
      compiler_params=_cparams("parallel", "arbitrary"),
  )(patches, wmat)

  conv_flat = conv_out[:M].reshape(N, OH * OW, Cpad)
  ssum = stats[:, 0, :].sum(axis=0)
  ssq = stats[:, 1, :].sum(axis=0)
  return conv_flat, ssum, ssq, OH, OW, OW


def _bn_act(conv_flat, scale, shift, N, OH, Wp, OW, C):
  x4 = conv_flat.reshape(N, OH, Wp, C)
  bh = _band(OH, Wp * C * 2 * 4, _band_budget())
  return pl.pallas_call(
      functools.partial(bn_act_kernel, ow=OW),
      out_shape=jax.ShapeDtypeStruct((N, OH, OW, C), jnp.bfloat16),
      grid_spec=pltpu.PrefetchScalarGridSpec(
          num_scalar_prefetch=0,
          grid=(N, OH // bh),
          in_specs=[
              pl.BlockSpec((1, bh, Wp, C), lambda n, r: (n, r, 0, 0)),
              pl.BlockSpec((1, C), lambda n, r: (0, 0)),
              pl.BlockSpec((1, C), lambda n, r: (0, 0)),
          ],
          out_specs=pl.BlockSpec((1, bh, OW, C), lambda n, r: (n, r, 0, 0))),
      compiler_params=_cparams("parallel", "parallel"),
  )(x4, scale.reshape(1, C), shift.reshape(1, C))


def _bn_pool(conv_flat, scale, shift, N, OH, Wp, OW, C):
  """Fused BN + LeakyReLU + MaxPool(2,2).  All reshapes below are free."""
  OH2, Wp2, OW2 = OH // 2, Wp // 2, OW // 2
  x5 = conv_flat.reshape(N, OH2, 2, Wp2, 2 * C)
  scale2 = jnp.tile(scale, 2).reshape(1, 2 * C)
  shift2 = jnp.tile(shift, 2).reshape(1, 2 * C)
  bh = _band(OH2, 2 * Wp2 * 2 * C * 2 * 3, _band_budget())
  return pl.pallas_call(
      functools.partial(bn_pool_kernel, c=C, ow2=OW2),
      out_shape=jax.ShapeDtypeStruct((N, OH2, OW2, C), jnp.bfloat16),
      grid_spec=pltpu.PrefetchScalarGridSpec(
          num_scalar_prefetch=0,
          grid=(N, OH2 // bh),
          in_specs=[
              pl.BlockSpec((1, bh, 2, Wp2, 2 * C),
                           lambda n, r: (n, r, 0, 0, 0)),
              pl.BlockSpec((1, 2 * C), lambda n, r: (0, 0)),
              pl.BlockSpec((1, 2 * C), lambda n, r: (0, 0)),
          ],
          out_specs=pl.BlockSpec((1, bh, OW2, C), lambda n, r: (n, r, 0, 0))),
      compiler_params=_cparams("parallel", "parallel"),
  )(x5, scale2, shift2)


def conv_bn_lrelu(x, layer, fuse_pool):
  k, stride, pad = layer["k"], layer["stride"], layer["pad"]
  N = x.shape[0]

  if stride == 1:
    conv_flat, ssum, ssq, OH, OW, Wp = _conv_s1(x, layer["w"], k, pad)
  else:
    conv_flat, ssum, ssq, OH, OW, Wp = _conv_im2col(x, layer["w"], k, stride,
                                                    pad)
  C = conv_flat.shape[-1]

  # Fold train-mode BatchNorm (batch statistics, biased variance) into a
  # per-channel scale/shift -- tiny (Cpad,) vectors computed in XLA.
  # Padded channels have gamma=0 so scale/shift stay exactly zero there.
  count = float(N * OH * OW)
  mean = ssum / count
  var = jnp.maximum(ssq / count - mean * mean, 0.0)
  inv = lax.rsqrt(var + BN_EPS)
  scale = layer["gamma"] * inv
  shift = layer["beta"] - mean * scale

  if fuse_pool:
    assert OH % 2 == 0 and OW % 2 == 0 and Wp % 2 == 0
    return _bn_pool(conv_flat, scale, shift, N, OH, Wp, OW, C)
  return _bn_act(conv_flat, scale, shift, N, OH, Wp, OW, C)


def linear(x2d, w, b, act, out_dtype, cout):
  M, K = x2d.shape
  Kw, Cp = w.shape
  assert Kw == K
  cblk = _k_tile(Cp, cap=512)
  kblk = _k_tile(K, cap=2048)
  n_c, n_k = Cp // cblk, K // kblk

  out = pl.pallas_call(
      functools.partial(fc_kernel, act=act),
      out_shape=jax.ShapeDtypeStruct((M, Cp), out_dtype),
      grid_spec=pltpu.PrefetchScalarGridSpec(
          num_scalar_prefetch=0,
          grid=(n_c, n_k),
          in_specs=[
              pl.BlockSpec((M, kblk), lambda c, kk: (0, kk)),
              _maybe_buffered((kblk, cblk), lambda c, kk: (kk, c),
                              3 if n_k >= 3 else None),
              pl.BlockSpec((1, cblk), lambda c, kk: (0, c)),
          ],
          out_specs=pl.BlockSpec((M, cblk), lambda c, kk: (0, c)),
          scratch_shapes=[pltpu.VMEM((M, cblk), jnp.float32)]),
      compiler_params=_cparams("parallel", "arbitrary"),
  )(x2d.astype(jnp.bfloat16), w, b.reshape(1, Cp))
  return out[:, :cout]


# ----------------------------------------------------------------------------
# Parameter construction (deterministic, synthetic; weights pre-cast/pre-pad)
# ----------------------------------------------------------------------------
def build_params(key, in_channels=3, split_size=1, num_boxes=2, num_classes=20):
  layers = []
  c_real, c_pad = in_channels, in_channels  # network input stays unpadded

  def conv_layer(k, cin_real, cin_pad, cout_real, ksize, stride, pad):
    cout_pad = _round_up(cout_real, 128)
    bound = 1.0 / (cin_real * ksize * ksize) ** 0.5
    w = jax.random.uniform(k, (cout_real, cin_real, ksize, ksize), jnp.float32,
                           -bound, bound)
    # (Cout, Cin, KH, KW) -> (KH*KW, Cin_pad, Cout_pad), zero-padded, bf16.
    w = jnp.transpose(w, (2, 3, 1, 0)).reshape(ksize * ksize, cin_real,
                                               cout_real)
    w = jnp.pad(w, ((0, 0), (0, cin_pad - cin_real),
                    (0, cout_pad - cout_real))).astype(jnp.bfloat16)
    gamma = jnp.pad(jnp.ones((cout_real,), jnp.float32),
                    ((0, cout_pad - cout_real),))
    beta = jnp.zeros((cout_pad,), jnp.float32)
    layer = dict(type="conv", w=w, gamma=gamma, beta=beta, k=ksize,
                 stride=stride, pad=pad, cout=cout_real)
    return layer, cout_real, cout_pad

  for item in architecture_config:
    if isinstance(item, tuple) and len(item) == 4:
      key, sub = jax.random.split(key)
      layer, c_real, c_pad = conv_layer(sub, c_real, c_pad, item[1], item[0],
                                        item[2], item[3])
      layers.append(layer)
    elif isinstance(item, tuple) and len(item) == 2:
      layers.append(dict(type="pool"))
    elif isinstance(item, list):
      conv1, conv2, num_repeats = item
      for _ in range(num_repeats):
        key, s1, s2 = jax.random.split(key, 3)
        layer, c_real, c_pad = conv_layer(s1, c_real, c_pad, conv1[1],
                                          conv1[0], conv1[2], conv1[3])
        layers.append(layer)
        layer, c_real, c_pad = conv_layer(s2, c_real, c_pad, conv2[1],
                                          conv2[0], conv2[2], conv2[3])
        layers.append(layer)

  S, B, C = split_size, num_boxes, num_classes
  fc1_in, fc1_out = 1024 * S * S, 4096
  fc2_in, fc2_out = 4096, S * S * (C + B * 5)
  fc2_out_pad = _round_up(fc2_out, 128)
  key, k1, k2, k3, k4 = jax.random.split(key, 5)
  b1 = 1.0 / fc1_in ** 0.5
  b2 = 1.0 / fc2_in ** 0.5
  fc1_w = jax.random.uniform(k1, (fc1_in, fc1_out), jnp.float32, -b1, b1)
  fc1_b = jax.random.uniform(k2, (fc1_out,), jnp.float32, -b1, b1)
  fc2_w = jax.random.uniform(k3, (fc2_in, fc2_out), jnp.float32, -b2, b2)
  fc2_b = jax.random.uniform(k4, (fc2_out,), jnp.float32, -b2, b2)
  return dict(
      darknet=layers,
      last_cout=c_real,
      fc1_w=fc1_w.astype(jnp.bfloat16),
      fc1_b=fc1_b,
      fc2_w=jnp.pad(fc2_w, ((0, 0),
                            (0, fc2_out_pad - fc2_out))).astype(jnp.bfloat16),
      fc2_b=jnp.pad(fc2_b, ((0, fc2_out_pad - fc2_out),)),
      fc2_out=fc2_out,
  )


# ----------------------------------------------------------------------------
# Forward pass
# ----------------------------------------------------------------------------
def yolo_v1_forward(params, x_nchw):
  x = jnp.transpose(x_nchw, (0, 2, 3, 1)).astype(jnp.bfloat16)  # NCHW -> NHWC
  layers = params["darknet"]
  i = 0
  while i < len(layers):
    layer = layers[i]
    if layer["type"] != "conv":
      # Every MaxPool in architecture_config directly follows a conv and is
      # fused into that conv's BN/activation kernel.
      raise NotImplementedError("standalone MaxPool is not expected here")
    fuse_pool = i + 1 < len(layers) and layers[i + 1]["type"] == "pool"
    x = conv_bn_lrelu(x, layer, fuse_pool)
    i += 2 if fuse_pool else 1

  n = x.shape[0]
  x = x[..., :params["last_cout"]]        # drop channel padding (no-op: 1024)
  x = jnp.transpose(x, (0, 3, 1, 2)).reshape(n, -1)  # PyTorch NCHW flatten
  x = linear(x, params["fc1_w"], params["fc1_b"], act=True,
             out_dtype=jnp.bfloat16, cout=params["fc1_w"].shape[1])
  # TODO(synk): nn.Dropout(p=0.5) depends on the framework RNG stream; it is
  # applied as identity here (eval-mode dropout).
  x = linear(x, params["fc2_w"], params["fc2_b"], act=False,
             out_dtype=jnp.float32, cout=params["fc2_out"])
  return x


if __name__ == "__main__":
  key = jax.random.PRNGKey(0)
  kp, kx = jax.random.split(key)
  # Small-but-consistent config: 64x64 input -> darknet output spatial 1x1,
  # so the FC head is built with split_size=1 (the module's kwargs path).
  params = build_params(kp, in_channels=3, split_size=1, num_boxes=2,
                        num_classes=20)
  x = jax.random.normal(kx, (2, 3, 64, 64), jnp.float32)  # NCHW like PyTorch
  out = yolo_v1_forward(params, x)
  out = jax.block_until_ready(out)
  assert out.shape == (2, 30), out.shape
  print("KERNEL_OK")
</pallas_src>

<mosaic_0001>
module attributes {stable_mosaic.version = 11 : i64} {
  func.func @conv_im2col_kernel(%arg0: i32, %arg1: i32, %arg2: memref<512x147xbf16, #tpu.memory_space<vmem>>, %arg3: memref<147x128xbf16, #tpu.memory_space<vmem>>, %arg4: memref<512x128xbf16, #tpu.memory_space<vmem>>, %arg5: memref<1x2x128xf32, #tpu.memory_space<vmem>>, %arg6: memref<512x128xf32, #tpu.memory_space<vmem>>) attributes {dimension_semantics = [#tpu.dimension_semantics<parallel>, #tpu.dimension_semantics<arbitrary>], iteration_bounds = array<i64: 4, 1>, scalar_prefetch = 0 : i64, scratch_operands = 1 : i64, tpu.core_type = #tpu.core_type<tc>, window_params = [{transform_indices = @transform_0, window_bounds = array<i64: 512, 147>}, {transform_indices = @transform_1, window_bounds = array<i64: 147, 128>}, {transform_indices = @transform_2, window_bounds = array<i64: 512, 128>}, {transform_indices = @transform_3, window_bounds = array<i64: 1, 2, 128>}]} {
    %c0_i32 = arith.constant 0 : i32
    %0 = arith.cmpi eq, %arg1, %c0_i32 : i32
    %1 = arith.extui %0 : i1 to i32
    %c0_i32_0 = arith.constant 0 : i32
    %2 = arith.cmpi ne, %1, %c0_i32_0 : i32
    scf.if %2 {
      %cst_10 = arith.constant 0.000000e+00 : f32
      %12 = vector.broadcast %cst_10 : f32 to vector<512x128xf32>
      %c0_11 = arith.constant 0 : index
      %c0_12 = arith.constant 0 : index
      %13 = vector.load %arg6[%c0_11, %c0_12] : memref<512x128xf32, #tpu.memory_space<vmem>>, vector<512x128xf32>
      tpu.vector_store %arg6[%c0_11, %c0_12], %12 {strides = array<i32>} : memref<512x128xf32, #tpu.memory_space<vmem>>, vector<512x128xf32>,
    } else {
    }
    %c0 = arith.constant 0 : index
    %c0_1 = arith.constant 0 : index
    %3 = vector.load %arg6[%c0, %c0_1] : memref<512x128xf32, #tpu.memory_space<vmem>>, vector<512x128xf32>
    %c0_2 = arith.constant 0 : index
    %c0_3 = arith.constant 0 : index
    %4 = vector.load %arg2[%c0_2, %c0_3] : memref<512x147xbf16, #tpu.memory_space<vmem>>, vector<512x147xbf16>
    %c0_4 = arith.constant 0 : index
    %c0_5 = arith.constant 0 : index
    %5 = vector.load %arg3[%c0_4, %c0_5] : memref<147x128xbf16, #tpu.memory_space<vmem>>, vector<147x128xbf16>
    %cst = arith.constant dense<0.000000e+00> : vector<512x128xf32>
    %6 = tpu.matmul %4, %5, %cst {dimension_numbers = #tpu.dot_dimension_numbers<[1], [0], [0], [1], [0, 0, 1, 1], [], []>} : vector<512x147xbf16>, vector<147x128xbf16>, vector<512x128xf32> -> vector<512x128xf32>
    %7 = arith.addf %3, %6 : vector<512x128xf32>
    %c0_6 = arith.constant 0 : index
    %c0_7 = arith.constant 0 : index
    %8 = vector.load %arg6[%c0_6, %c0_7] : memref<512x128xf32, #tpu.memory_space<vmem>>, vector<512x128xf32>
    tpu.vector_store %arg6[%c0_6, %c0_7], %7 {strides = array<i32>} : memref<512x128xf32, #tpu.memory_space<vmem>>, vector<512x128xf32>,
    %c0_i32_8 = arith.constant 0 : i32
    %9 = arith.cmpi eq, %arg1, %c0_i32_8 : i32
    %10 = arith.extui %9 : i1 to i32
    %c0_i32_9 = arith.constant 0 : i32
    %11 = arith.cmpi ne, %10, %c0_i32_9 : i32
    scf.if %11 {
      %c0_10 = arith.constant 0 : index
      %c0_11 = arith.constant 0 : index
      %12 = vector.load %arg6[%c0_10, %c0_11] : memref<512x128xf32, #tpu.memory_space<vmem>>, vector<512x128xf32>
      %13 = arith.truncf %12 : vector<512x128xf32> to vector<512x128xbf16>
      %c0_12 = arith.constant 0 : index
      %c0_13 = arith.constant 0 : index
      %14 = vector.load %arg4[%c0_12, %c0_13] : memref<512x128xbf16, #tpu.memory_space<vmem>>, vector<512x128xbf16>
      tpu.vector_store %arg4[%c0_12, %c0_13], %13 {strides = array<i32>} : memref<512x128xbf16, #tpu.memory_space<vmem>>, vector<512x128xbf16>,
      %cst_14 = arith.constant dense<0.000000e+00> : vector<128xf32>
      %15 = vector.multi_reduction <add>, %12, %cst_14 [0] : vector<512x128xf32> to vector<128xf32>
      %16 = vector.shape_cast %15 : vector<128xf32> to vector<1x128xf32>
      %17 = arith.mulf %12, %12 : vector<512x128xf32>
      %cst_15 = arith.constant dense<0.000000e+00> : vector<128xf32>
      %18 = vector.multi_reduction <add>, %17, %cst_15 [0] : vector<512x128xf32> to vector<128xf32>
      %19 = vector.shape_cast %18 : vector<128xf32> to vector<1x128xf32>
      %20 = tpu.concatenate %16, %19 in 0 : vector<1x128xf32>, vector<1x128xf32> -> vector<2x128xf32>
      %21 = vector.shape_cast %20 : vector<2x128xf32> to vector<1x2x128xf32>
      %c0_16 = arith.constant 0 : index
      %c0_17 = arith.constant 0 : index
      %c0_18 = arith.constant 0 : index
      %22 = vector.load %arg5[%c0_16, %c0_17, %c0_18] : memref<1x2x128xf32, #tpu.memory_space<vmem>>, vector<1x2x128xf32>
      tpu.vector_store %arg5[%c0_16, %c0_17, %c0_18], %21 {strides = array<i32>} : memref<1x2x128xf32, #tpu.memory_space<vmem>>, vector<1x2x128xf32>,
    } else {
    }
    return
  }
  func.func @transform_0(%arg0: i32, %arg1: i32) -> (i32, i32) {
    %c0_i32 = arith.constant 0 : i32
    return %arg0, %arg1 : i32, i32
  }
  func.func @transform_1(%arg0: i32, %arg1: i32) -> (i32, i32) {
    %c0_i32 = arith.constant 0 : i32
    %c0_i32_0 = arith.constant 0 : i32
    return %arg1, %c0_i32 : i32, i32
  }
  func.func @transform_2(%arg0: i32, %arg1: i32) -> (i32, i32) {
    %c0_i32 = arith.constant 0 : i32
    %c0_i32_0 = arith.constant 0 : i32
    return %arg0, %c0_i32 : i32, i32
  }
  func.func @transform_3(%arg0: i32, %arg1: i32) -> (i32, i32, i32) {
    %c0_i32 = arith.constant 0 : i32
    %c0_i32_0 = arith.constant 0 : i32
    %c0_i32_1 = arith.constant 0 : i32
    return %arg0, %c0_i32, %c0_i32_0 : i32, i32, i32
  }
}

</mosaic_0001>

<bundles_post_ra>
// kernel: tpu_custom_call.1
= control target key start
LH: loop header
LB: loop body
LE: loop exit
PB: predicated region body
PF: predicated region fallthrough
CT: control target
= control target key end

     0   :  { %9 = vsyncpa [#allocation4], 0  ;;  %s3342_s0 = inlined_call_operand.vmem [shape: bf16[2048,147], index: 0, kind: input, shape index: {}]   ;;  %s3343_s1 = inlined_call_operand.vmem [shape: bf16[147,128], index: 1, kind: input, shape index: {}]   ;;  %s3344_s2 = inlined_call_operand.hbm [shape: bf16[2048,128], index: 2, kind: output, shape index: {0}]   ;;  %s3345_s3 = inlined_call_operand.hbm [shape: f32[4,2,128], index: 3, kind: output, shape index: {1}]  }
   0x1   :  { %11 = vsyncpa [#allocation4 + $0x1], 0 }
   0x2   :  { %12 = vsyncpa [#allocation6], 0 }
   0x3   :  { %14 = vsyncpa [#allocation6 + $0x1], 0  ;;  %s2837_s12 = smov 0   ;;  %s2839_s13 = smov 0  }
   0x4   :  { %s2841_s14 = smov 0   ;;  %s2843_s15 = smov 0  }
   0x5   :  { %s2845_s16 = smov 0   ;;  %s2847_s17 = smov 0  }
   0x6 LB: > { %s2064_s18 = sadd.s32 4294967295, %s2809_s17   ;;  %s2065_s19 = sadd.s32 4294967294, %s2809_s17   ;;  %s2809_s17 = sphi %s2847_s17, %s20_s17   ;;  %s2805_s16 = sphi %s2845_s16, %s3352_s16   ;;  %s2801_s15 = sphi %s2843_s15, %s3351_s15   ;;  %s2797_s14 = sphi %s2841_s14, %s3350_s14   ;;  %s2793_s13 = sphi %s2839_s13, %s3349_s13   ;;  %s2789_s12 = sphi %s2837_s12, %s3348_s12  }
   0x7   : > { %s32_s20 = sadd.s32 1, %s2805_s16  ;;  %s93_s21 = sadd.s32 1, %s2797_s14 }
   0x8   : > { %p34_p0 = scmp.ge.s32.totalorder %s32_s20, 4  ;;  %p103_p1 = scmp.ne.s32.totalorder %s2797_s14, %s2793_s13 }
   0x9   : > { %p104_p2 = scmp.eq.s32.totalorder %s2064_s18, 3  ;;  %p109_p3 = scmp.ne.s32.totalorder %s2793_s13, %s2789_s12 }
   0xa   : > { %s3354_s20 = smov (%p34_p0, %s32_s20), 0  ;;  %p110_p5 = scmp.eq.s32.totalorder %s2065_s19, 3 }
   0xb   : > { %p2877_p4 = por %p104_p2, %p103_p1  ;;  %s90_s23 = ssub.s32 %s2805_s16, %s3354_s20 }
   0xc   : > { %p2069_p6 = scmp.ge.s32.totalorder %s2809_s17, 1  ;;  %p91_p7 = scmp.eq.s32.totalorder %s90_s23, 0 }
   0xd   : > { %p2884_p8 = por %p110_p5, %p109_p3  ;;  %p178_p9 = scmp.lt.s32.totalorder %s2809_s17, 5 }
   0xe   : > { %s2890_s25 = scalar_select %p91_p7, %s2797_s14, %s93_s21  }
   0xf   : > { %p179_p10 = pnand %p2069_p6, %p178_p9 }
  0x10   : > { %v2593_v0 = vld [vmem:[%s3343_s1] sm:$0xff] (!%p179_p10)   ;;  %v2811_v1 = vmov (!%p179_p10), 0   ;;  %v2594_v2 = vld [vmem:[%s3343_s1 + $0x8] sm:$0xff] (!%p179_p10)   ;;  %v2595_v3 = vld [vmem:[%s3343_s1 + $0x10] sm:$0xff] (!%p179_p10)   ;;  %s2072_s5 = sshll.u32 (!%p179_p10), %s2801_s15, 6  ;;  %vm797_vm0 = vcmask (!%p179_p10), 154624  }
  0x11   : > { %182 = sbr.rel (%p179_p10) target bundleno = 497 (0x1f1), region = 28  ;;  %901 = vmatprep.subr.bf16.mxu0 (!%p179_p10), %v2811_v1  ;;  %2509 = vmatprep.subr.bf16.mxu1 (!%p179_p10), %v2811_v1  ;;  %p219_p11 = scmp.lt.s32.totalorder (!%p179_p10), %s2072_s5, 255  ;;  %v2596_v4 = vld [vmem:[%s3343_s1 + $0x18] sm:$0xff] (!%p179_p10)   ;;  %v2597_v5 = vld [vmem:[%s3343_s1 + $0x20] sm:$0xff] (!%p179_p10)   ;;  %v2598_v7 = vld [vmem:[%s3343_s1 + $0x28] sm:$0xff] (!%p179_p10)   ;;  %vm894_vm1 = vcmask (!%p179_p10), 1040384  }
  0x12   : > { %902 = vmatpush1.bf16.msra.mxu0 (!%p179_p10), %v2593_v0  ;;  %2519 = vmatpush1.bf16.msra.mxu1 (!%p179_p10), %v2593_v0  ;;  %v2599_v8 = vld [vmem:[%s3343_s1 + $0x30] sm:$0xff] (!%p179_p10)   ;;  %v2600_v10 = vld [vmem:[%s3343_s1 + $0x38] sm:$0xff] (!%p179_p10)   ;;  %vm895_vm2 = vcmask (!%p179_p10), 1041408   ;;  %v2812_v11 = vmov (!%p179_p10), 65535   ;;  %v2601_v13 = vld [vmem:[%s3343_s1 + $0x40] sm:$0xff] (!%p179_p10)   ;;  %s3026_s7 = sand.u32 (!%p179_p10), 1, %s2793_s13  }
  0x13   : > { %903 = vmatprep.subr.bf16.mxu0 (!%p179_p10), %v2811_v1  ;;  %2510 = vmatprep.subr.bf16.mxu1 (!%p179_p10), %v2811_v1  ;;  %v896_v12 = vsel (!%p179_p10), %vm894_vm1, 4294967295, %v2812_v11  ;;  %v2602_v14 = vld [vmem:[%s3343_s1 + $0x48] ss:$0 sps:$4 sm:$0x33] (!%p179_p10)   ;;  %s2317_s10 = sshll.u32 (!%p179_p10), %s2801_s15, 12  ;;  %s1910_s23 = scalar_lea.sflag (!%p179_p10), [#allocation4], %s3026_s7 }
  0x14   : > { %v897_v15 = vsel (!%p179_p10), %vm895_vm2, %v896_v12, 0  ;;  %s3160_s21 = scalar_lea.hbm (!%p179_p10), %s3344_s2, %s2317_s10  ;;  %s2813_s27 = smov (!%p179_p10), [#allocation3]  }
  0x15   : > { %v899_v16 = vand.u32 (!%p179_p10), %v2602_v14, %v897_v15  ;;  %s2703_s28 = sshll.u32 (!%p179_p10), %s2813_s27, 4  ;;  %s2704_s28 = int_to_ptr.vmem [resolvable:$false] %s2703_s28 }
  0x16   : > { %904 = vmatpush1.bf16.msra.mxu0 (!%p179_p10), %v2594_v2  ;;  %2520 = vmatpush1.bf16.msra.mxu1 (!%p179_p10), %v2594_v2  ;;  %s2705_s29 = scalar_lea.vmem (!%p179_p10), %s2704_s28, 8192 }
  0x17   : > { %905 = vmatprep.subr.bf16.mxu0 (!%p179_p10), %v2811_v1  ;;  %2511 = vmatprep.subr.bf16.mxu1 (!%p179_p10), %v2811_v1 }
  0x18   : > { %s3356_s5 = smov (!%p219_p11, %s2072_s5), 255 }
  0x19   : > { %s2252_s8 = sshll.u32 %s3356_s5, 3 }
  0x1a   : > { %906 = vmatpush1.bf16.msra.mxu0 %v2595_v3  ;;  %2521 = vmatpush1.bf16.msra.mxu1 %v2595_v3  ;;  %s2908_s11 = scalar_lea.vmem %s3342_s0, %s2252_s8  ;;  %s2070_s8 = sshll.u32 %s3026_s7, 8 }
  0x1b   : > { %907 = vmatprep.subr.bf16.mxu0 %v2811_v1  ;;  %2512 = vmatprep.subr.bf16.mxu1 %v2811_v1  ;;  %v2605_v6 = vld [vmem:[%s2908_s11 + $0x4] ss:$8 sps:$4 sm:$0xff]   ;;  %v2603_v17 = vld [vmem:[%s2908_s11] ss:$8 sps:$4 sm:$0xff]   ;;  %v2606_v18 = vld [vmem:[%s2908_s11 + $0x14] ss:$8 sps:$4 sm:$0xff]  }
  0x1c   : > { %2149 = vmatprep.mubr.msk.bf16.mxu0 %vm797_vm0, %v2605_v6  ;;  %v2629_v9 = vld [vmem:[%s2908_s11 + $0x104] ss:$8 sps:$4 sm:$0xff]   ;;  %v2627_v19 = vld [vmem:[%s2908_s11 + $0x100] ss:$8 sps:$4 sm:$0xff]   ;;  %v2633_v20 = vld [vmem:[%s2908_s11 + $0x114] ss:$8 sps:$4 sm:$0xff]  }
  0x1d   : > { %2165 = vmatprep.mubr.msk.bf16.mxu1 %vm797_vm0, %v2629_v9  ;;  %v2608_v21 = vld [vmem:[%s2908_s11 + $0x10] ss:$8 sps:$4 sm:$0xff]   ;;  %v2609_v22 = vld [vmem:[%s2908_s11 + $0x24] ss:$8 sps:$4 sm:$0xff]   ;;  %v2611_v25 = vld [vmem:[%s2908_s11 + $0x20] ss:$8 sps:$4 sm:$0xff]  }
  0x1e   : > { %908 = vmatpush1.bf16.msra.mxu0 %v2596_v4  ;;  %2522 = vmatpush1.bf16.msra.mxu1 %v2596_v4  ;;  %v2635_v23 = vld [vmem:[%s2908_s11 + $0x110] ss:$8 sps:$4 sm:$0xff]   ;;  %v2639_v24 = vld [vmem:[%s2908_s11 + $0x124] ss:$8 sps:$4 sm:$0xff]   ;;  %v2612_v26 = vld [vmem:[%s2908_s11 + $0x34] ss:$8 sps:$4 sm:$0xff]  }
  0x1f   : > { %909 = vmatprep.subr.bf16.mxu0 %v2811_v1  ;;  %2513 = vmatprep.subr.bf16.mxu1 %v2811_v1  ;;  %v2641_v27 = vld [vmem:[%s2908_s11 + $0x120] ss:$8 sps:$4 sm:$0xff]   ;;  %v2645_v28 = vld [vmem:[%s2908_s11 + $0x134] ss:$8 sps:$4 sm:$0xff]   ;;  %v2614_v29 = vld [vmem:[%s2908_s11 + $0x30] ss:$8 sps:$4 sm:$0xff]  }
  0x20   : > { %v2647_v30 = vld [vmem:[%s2908_s11 + $0x130] ss:$8 sps:$4 sm:$0xff]   ;;  %v2615_v31 = vld [vmem:[%s2908_s11 + $0x44] ss:$8 sps:$4 sm:$0xff]   ;;  %v2617_v33 = vld [vmem:[%s2908_s11 + $0x40] ss:$8 sps:$4 sm:$0xff]  }
  0x21   : > { %v2651_v32 = vld [vmem:[%s2908_s11 + $0x144] ss:$8 sps:$4 sm:$0xff]   ;;  %v2653_v34 = vld [vmem:[%s2908_s11 + $0x140] ss:$8 sps:$4 sm:$0xff]   ;;  %v2618_v35 = vld [vmem:[%s2908_s11 + $0x54] ss:$8 sps:$4 sm:$0xff]  }
  0x22   : > { %910 = vmatpush1.bf16.msra.mxu0 %v2597_v5  ;;  %2523 = vmatpush1.bf16.msra.mxu1 %v2597_v5  ;;  %v2657_v36 = vld [vmem:[%s2908_s11 + $0x154] ss:$8 sps:$4 sm:$0xff]   ;;  %v2620_v37 = vld [vmem:[%s2908_s11 + $0x50] ss:$8 sps:$4 sm:$0xff]   ;;  %v2621_v39 = vld [vmem:[%s2908_s11 + $0x64] ss:$8 sps:$4 sm:$0xff]  }
  0x23   : > { %911 = vmatprep.subr.bf16.mxu0 %v2811_v1  ;;  %2514 = vmatprep.subr.bf16.mxu1 %v2811_v1  ;;  %v2659_v38 = vld [vmem:[%s2908_s11 + $0x150] ss:$8 sps:$4 sm:$0xff]   ;;  %v2663_v40 = vld [vmem:[%s2908_s11 + $0x164] ss:$8 sps:$4 sm:$0xff]   ;;  %v2623_v41 = vld [vmem:[%s2908_s11 + $0x60] ss:$8 sps:$4 sm:$0xff]  }
  0x24   : > { %v2665_v42 = vld [vmem:[%s2908_s11 + $0x160] ss:$8 sps:$4 sm:$0xff]   ;;  %v2624_v43 = vld [vmem:[%s2908_s11 + $0x74] ss:$8 sps:$4 sm:$0xff]   ;;  %v2626_v45 = vld [vmem:[%s2908_s11 + $0x70] ss:$8 sps:$4 sm:$0xff]  }
  0x25   : > { %v2669_v44 = vld [vmem:[%s2908_s11 + $0x174] ss:$8 sps:$4 sm:$0xff]   ;;  %v2671_v46 = vld [vmem:[%s2908_s11 + $0x170] ss:$8 sps:$4 sm:$0xff]   ;;  %v2630_v47 = vld [vmem:[%s2908_s11 + $0x84] ss:$8 sps:$4 sm:$0xff]  }
  0x26   : > { %912 = vmatpush1.bf16.msra.mxu0 %v2598_v7  ;;  %2524 = vmatpush1.bf16.msra.mxu1 %v2598_v7  ;;  %v2675_v48 = vld [vmem:[%s2908_s11 + $0x184] ss:$8 sps:$4 sm:$0xff]   ;;  %v2632_v49 = vld [vmem:[%s2908_s11 + $0x80] ss:$8 sps:$4 sm:$0xff]   ;;  %v2636_v51 = vld [vmem:[%s2908_s11 + $0x94] ss:$8 sps:$4 sm:$0xff]  }
  0x27   : > { %913 = vmatprep.subr.bf16.mxu0 %v2811_v1  ;;  %2515 = vmatprep.subr.bf16.mxu1 %v2811_v1  ;;  %v2677_v50 = vld [vmem:[%s2908_s11 + $0x180] ss:$8 sps:$4 sm:$0xff]   ;;  %v2678_v52 = vld [vmem:[%s2908_s11 + $0x194] ss:$8 sps:$4 sm:$0xff]   ;;  %v2638_v53 = vld [vmem:[%s2908_s11 + $0x90] ss:$8 sps:$4 sm:$0xff]  }
  0x28   : > { %v2680_v54 = vld [vmem:[%s2908_s11 + $0x190] ss:$8 sps:$4 sm:$0xff]   ;;  %v2642_v55 = vld [vmem:[%s2908_s11 + $0xa4] ss:$8 sps:$4 sm:$0xff]   ;;  %v2644_v57 = vld [vmem:[%s2908_s11 + $0xa0] ss:$8 sps:$4 sm:$0xff]  }
  0x29   : > { %v2681_v56 = vld [vmem:[%s2908_s11 + $0x1a4] ss:$8 sps:$4 sm:$0xff]   ;;  %v2683_v58 = vld [vmem:[%s2908_s11 + $0x1a0] ss:$8 sps:$4 sm:$0xff]   ;;  %v2648_v59 = vld [vmem:[%s2908_s11 + $0xb4] ss:$8 sps:$4 sm:$0xff]  }
  0x2a   : > { %914 = vmatpush1.bf16.msra.mxu0 %v2599_v8  ;;  %2525 = vmatpush1.bf16.msra.mxu1 %v2599_v8  ;;  %v2684_v60 = vld [vmem:[%s2908_s11 + $0x1b4] ss:$8 sps:$4 sm:$0xff]   ;;  %v2650_v61 = vld [vmem:[%s2908_s11 + $0xb0] ss:$8 sps:$4 sm:$0xff]   ;;  %v2654_v63 = vld [vmem:[%s2908_s11 + $0xc4] ss:$8 sps:$4 sm:$0xff]  }
  0x2b   : > { %915 = vmatprep.subr.bf16.mxu0 %v2811_v1  ;;  %2516 = vmatprep.subr.bf16.mxu1 %v2811_v1  ;;  %v2686_v62 = vld [vmem:[%s2908_s11 + $0x1b0] ss:$8 sps:$4 sm:$0xff]   ;;  %v2687_v0 = vld [vmem:[%s2908_s11 + $0x1c4] ss:$8 sps:$4 sm:$0xff]   ;;  %v2689_v2 = vld [vmem:[%s2908_s11 + $0x1c0] ss:$8 sps:$4 sm:$0xff]  }
  0x2c   : > { %v2660_v3 = vld [vmem:[%s2908_s11 + $0xd4] ss:$8 sps:$4 sm:$0xff]   ;;  %v2662_v5 = vld [vmem:[%s2908_s11 + $0xd0] ss:$8 sps:$4 sm:$0xff]   ;;  %v2666_v7 = vld [vmem:[%s2908_s11 + $0xe4] ss:$8 sps:$4 sm:$0xff]  }
  0x2d   : > { %v2690_v4 = vld [vmem:[%s2908_s11 + $0x1d4] ss:$8 sps:$4 sm:$0xff]   ;;  %v2692_v6 = vld [vmem:[%s2908_s11 + $0x1d0] ss:$8 sps:$4 sm:$0xff]   ;;  %v2693_v8 = vld [vmem:[%s2908_s11 + $0x1e4] ss:$8 sps:$4 sm:$0xff]  }
  0x2e   : > { %916 = vmatpush1.bf16.msra.mxu0 %v2600_v10  ;;  %2526 = vmatpush1.bf16.msra.mxu1 %v2600_v10  ;;  %v2668_v9 = vld [vmem:[%s2908_s11 + $0xe0] ss:$8 sps:$4 sm:$0xff]   ;;  %v2672_v11 = vld [vmem:[%s2908_s11 + $0xf4] ss:$8 sps:$4 sm:$0xff]   ;;  %v2698_v14 = vld [vmem:[%s2908_s11 + $0x1f0] ss:$8 sps:$4 sm:$0xff]  }
  0x2f   : > { %917 = vmatprep.subr.bf16.mxu0 %v2811_v1  ;;  %2517 = vmatprep.subr.bf16.mxu1 %v2811_v1  ;;  %v2695_v10 = vld [vmem:[%s2908_s11 + $0x1e0] ss:$8 sps:$4 sm:$0xff]   ;;  %v2696_v12 = vld [vmem:[%s2908_s11 + $0x1f4] ss:$8 sps:$4 sm:$0xff]   ;;  %s3035_s9 = scalar_lea.vmem [#allocation3], %s2070_s8 }
  0x32   : > { %918 = vmatpush1.bf16.msra.mxu0 %v2601_v13  ;;  %2527 = vmatpush1.bf16.msra.mxu1 %v2601_v13  ;;  %v2674_v13 = vld [vmem:[%s2908_s11 + $0xf0] ss:$8 sps:$4 sm:$0xff]  }
  0x33   : > { %919 = vmatprep.subr.bf16.mxu0 %v2811_v1  ;;  %2518 = vmatprep.subr.bf16.mxu1 %v2811_v1  ;;  %v2656_v1 = vld [vmem:[%s2908_s11 + $0xc0] ss:$8 sps:$4 sm:$0xff]   ;;  %s1928_s11 = sshll.u32 %s3035_s9, 4  ;;  %s3162_s11 = int_to_ptr.vmem [resolvable:$true] %s1928_s11 }
  0x34   : > { %s2699_s26 = scalar_lea.vmem %s3162_s11, 4096  ;;  %p2706_p1 = scmp.lt.s32.totalorder %s3162_s11, %s2704_s28 }
  0x35   : > { %p2700_p12 = scmp.ne.s32.totalorder %s3162_s11, %s2699_s26  ;;  %p2707_p2 = scmp.lt.s32.totalorder %s2705_s29, %s2699_s26 }
  0x36   : > { %920 = vmatpush1.bf16.msra.mxu0 %v899_v16  ;;  %2528 = vmatpush1.bf16.msra.mxu1 %v899_v16 }
  0x37   : > { %p2701_p13 = pnand %p2700_p12, %p2877_p4  ;;  %p2708_p3 = por %p2707_p2, %p2706_p1 }
  0x39   : > { %934 = vmatmul.mubr.bf16.vlgmr.msra.gmra.mrb[0].mxu0 %v2603_v17  ;;  %1062 = vmatmul.mubr.bf16.vlgmr.msra.gmra.mrb[0].mxu1 %v2627_v19  ;;  %p2702_p0 = pneg %p2701_p13 }
  0x3a   : > { %2150 = vmatprep.mubr.msk.bf16.mxu0 %vm797_vm0, %v2606_v18  ;;  %2166 = vmatprep.mubr.msk.bf16.mxu1 %vm797_vm0, %v2633_v20 }
  0x3b   : > { %p2709_p5 = pnand %p2708_p3, %p2702_p0 }
  0x41   : > { %942 = vmatmul.mubr.bf16.gmra.mrb[4].mxu0 %v2608_v21  ;;  %1070 = vmatmul.mubr.bf16.gmra.mrb[4].mxu1 %v2635_v23 }
  0x42   : > { %2151 = vmatprep.mubr.msk.bf16.mxu0 %vm797_vm0, %v2609_v22  ;;  %2167 = vmatprep.mubr.msk.bf16.mxu1 %vm797_vm0, %v2639_v24 }
  0x49   : > { %950 = vmatmul.mubr.bf16.gmra.mrb[8].mxu0 %v2611_v25  ;;  %1078 = vmatmul.mubr.bf16.gmra.mrb[8].mxu1 %v2641_v27 }
  0x4a   : > { %2152 = vmatprep.mubr.msk.bf16.mxu0 %vm797_vm0, %v2612_v26  ;;  %2168 = vmatprep.mubr.msk.bf16.mxu1 %vm797_vm0, %v2645_v28 }
  0x51   : > { %958 = vmatmul.mubr.bf16.gmra.mrb[12].mxu0 %v2614_v29  ;;  %1086 = vmatmul.mubr.bf16.gmra.mrb[12].mxu1 %v2647_v30 }
  0x52   : > { %2153 = vmatprep.mubr.msk.bf16.mxu0 %vm797_vm0, %v2615_v31  ;;  %2169 = vmatprep.mubr.msk.bf16.mxu1 %vm797_vm0, %v2651_v32 }
  0x59   : > { %966 = vmatmul.mubr.bf16.gmra.mrb[16].mxu0 %v2617_v33  ;;  %1094 = vmatmul.mubr.bf16.gmra.mrb[16].mxu1 %v2653_v34 }
  0x5a   : > { %2154 = vmatprep.mubr.msk.bf16.mxu0 %vm797_vm0, %v2618_v35  ;;  %2170 = vmatprep.mubr.msk.bf16.mxu1 %vm797_vm0, %v2657_v36 }
  0x61   : > { %974 = vmatmul.mubr.bf16.gmra.mrb[20].mxu0 %v2620_v37  ;;  %1102 = vmatmul.mubr.bf16.gmra.mrb[20].mxu1 %v2659_v38 }
  0x62   : > { %2155 = vmatprep.mubr.msk.bf16.mxu0 %vm797_vm0, %v2621_v39  ;;  %2171 = vmatprep.mubr.msk.bf16.mxu1 %vm797_vm0, %v2663_v40 }
  0x69   : > { %982 = vmatmul.mubr.bf16.gmra.mrb[24].mxu0 %v2623_v41  ;;  %1110 = vmatmul.mubr.bf16.gmra.mrb[24].mxu1 %v2665_v42 }
  0x6a   : > { %2156 = vmatprep.mubr.msk.bf16.mxu0 %vm797_vm0, %v2624_v43  ;;  %2172 = vmatprep.mubr.msk.bf16.mxu1 %vm797_vm0, %v2669_v44 }
  0x71   : > { %990 = vmatmul.mubr.bf16.gmra.mrb[28].mxu0 %v2626_v45  ;;  %1118 = vmatmul.mubr.bf16.gmra.mrb[28].mxu1 %v2671_v46 }
  0x72   : > { %2157 = vmatprep.mubr.msk.bf16.mxu0 %vm797_vm0, %v2630_v47  ;;  %2173 = vmatprep.mubr.msk.bf16.mxu1 %vm797_vm0, %v2675_v48 }
  0x79   : > { %998 = vmatmul.mubr.bf16.gmra.mrb[32].mxu0 %v2632_v49  ;;  %1126 = vmatmul.mubr.bf16.gmra.mrb[32].mxu1 %v2677_v50 }
  0x7a   : > { %2158 = vmatprep.mubr.msk.bf16.mxu0 %vm797_vm0, %v2636_v51  ;;  %2174 = vmatprep.mubr.msk.bf16.mxu1 %vm797_vm0, %v2678_v52 }
  0x81   : > { %1006 = vmatmul.mubr.bf16.gmra.mrb[36].mxu0 %v2638_v53  ;;  %1134 = vmatmul.mubr.bf16.gmra.mrb[36].mxu1 %v2680_v54 }
  0x82   : > { %2159 = vmatprep.mubr.msk.bf16.mxu0 %vm797_vm0, %v2642_v55  ;;  %2175 = vmatprep.mubr.msk.bf16.mxu1 %vm797_vm0, %v2681_v56 }
  0x89   : > { %1014 = vmatmul.mubr.bf16.gmra.mrb[40].mxu0 %v2644_v57  ;;  %1142 = vmatmul.mubr.bf16.gmra.mrb[40].mxu1 %v2683_v58 }
  0x8a   : > { %2160 = vmatprep.mubr.msk.bf16.mxu0 %vm797_vm0, %v2648_v59  ;;  %2176 = vmatprep.mubr.msk.bf16.mxu1 %vm797_vm0, %v2684_v60 }
  0x91   : > { %1022 = vmatmul.mubr.bf16.gmra.mrb[44].mxu0 %v2650_v61  ;;  %1150 = vmatmul.mubr.bf16.gmra.mrb[44].mxu1 %v2686_v62 }
  0x92   : > { %2161 = vmatprep.mubr.msk.bf16.mxu0 %vm797_vm0, %v2654_v63  ;;  %2177 = vmatprep.mubr.msk.bf16.mxu1 %vm797_vm0, %v2687_v0 }
  0x99   : > { %1030 = vmatmul.mubr.bf16.gmra.mrb[48].mxu0 %v2656_v1  ;;  %1158 = vmatmul.mubr.bf16.gmra.mrb[48].mxu1 %v2689_v2 }
  0x9a   : > { %2162 = vmatprep.mubr.msk.bf16.mxu0 %vm797_vm0, %v2660_v3  ;;  %2178 = vmatprep.mubr.msk.bf16.mxu1 %vm797_vm0, %v2690_v4 }
  0xa1   : > { %1038 = vmatmul.mubr.bf16.gmra.mrb[52].mxu0 %v2662_v5  ;;  %1166 = vmatmul.mubr.bf16.gmra.mrb[52].mxu1 %v2692_v6 }
  0xa2   : > { %2163 = vmatprep.mubr.msk.bf16.mxu0 %vm797_vm0, %v2666_v7  ;;  %2179 = vmatprep.mubr.msk.bf16.mxu1 %vm797_vm0, %v2693_v8 }
  0xa9   : > { %1046 = vmatmul.mubr.bf16.gmra.mrb[56].mxu0 %v2668_v9  ;;  %1174 = vmatmul.mubr.bf16.gmra.mrb[56].mxu1 %v2695_v10 }
  0xaa   : > { %2164 = vmatprep.mubr.msk.bf16.mxu0 %vm797_vm0, %v2672_v11  ;;  %2180 = vmatprep.mubr.msk.bf16.mxu1 %vm797_vm0, %v2696_v12 }
  0xb1   : > { %1054 = vmatmul.mubr.bf16.gmra.mrb[60].mxu0 %v2674_v13  ;;  %1182 = vmatmul.mubr.bf16.gmra.mrb[60].mxu1 %v2698_v14 }
 0x10c   : > { %v935_v15 = vpop.f32.mrb[0].mxu0  ;;  %v3029_v16 = vpop.f32.mrb[0].mxu1 }
 0x10d   : > { %v937_v17 = vpop.f32.mrb[1].mxu0  ;;  %v1065_v18 = vpop.f32.mrb[1].mxu1  ;;  %v1774_v19 = vmul.f32 %v935_v15, %v935_v15 }
 0x10e   : > { %v938_v20 = vpop.f32.mrb[2].mxu0  ;;  %v3031_v21 = vpop.f32.mrb[2].mxu1 }
 0x10f   : > { %v2321_v22 = vpack.c.bf16 %v938_v20, %v935_v15  ;;  %v1705_v23 = vadd.f32 %v938_v20, %v935_v15  ;;  %v1775_v24 = vmul.f32 %v938_v20, %v938_v20  ;;  %v940_v25 = vpop.f32.mrb[3].mxu0  ;;  %v2401_v26 = vpack.c.bf16 %v3031_v21, %v3029_v16  ;;  %v1068_v27 = vpop.f32.mrb[3].mxu1 }
 0x111   : > { %2322 = vst [vmem:[%s3035_s9] sm:$0xff] %v2321_v22   ;;  %v1838_v28 = vadd.f32 %v1775_v24, %v1774_v19  ;;  %2493 = vst [vmem:[%s3035_s9 + $0x80] sm:$0xff] %v2401_v26  }
 0x114   : > { %v943_v29 = vpop.f32.mrb[4].mxu0  ;;  %v3039_v30 = vpop.f32.mrb[4].mxu1 }
 0x115   : > { %v1706_v31 = vadd.f32 %v1705_v23, %v943_v29  ;;  %v1776_v32 = vmul.f32 %v943_v29, %v943_v29  ;;  %v945_v33 = vpop.f32.mrb[5].mxu0  ;;  %v1073_v34 = vpop.f32.mrb[5].mxu1 }
 0x116   : > { %v946_v35 = vpop.f32.mrb[6].mxu0  ;;  %v3041_v36 = vpop.f32.mrb[6].mxu1 }
 0x117   : > { %v1839_v37 = vadd.f32 %v1838_v28, %v1776_v32  ;;  %v2326_v38 = vpack.c.bf16 %v946_v35, %v943_v29  ;;  %v1707_v39 = vadd.f32 %v1706_v31, %v946_v35  ;;  %v1777_v40 = vmul.f32 %v946_v35, %v946_v35  ;;  %v948_v41 = vpop.f32.mrb[7].mxu0  ;;  %v1076_v42 = vpop.f32.mrb[7].mxu1 }
 0x118   : > { %v2406_v43 = vpack.c.bf16 %v3041_v36, %v3039_v30 }
 0x119   : > { %2478 = vst [vmem:[%s3035_s9 + $0x8] sm:$0xff] %v2326_v38   ;;  %v1840_v44 = vadd.f32 %v1839_v37, %v1777_v40 }
 0x11a   : > { %2494 = vst [vmem:[%s3035_s9 + $0x88] sm:$0xff] %v2406_v43  }
 0x11c   : > { %v951_v45 = vpop.f32.mrb[8].mxu0  ;;  %v3047_v46 = vpop.f32.mrb[8].mxu1 }
 0x11d   : > { %v1708_v47 = vadd.f32 %v1707_v39, %v951_v45  ;;  %v1778_v48 = vmul.f32 %v951_v45, %v951_v45  ;;  %v953_v49 = vpop.f32.mrb[9].mxu0  ;;  %v1081_v50 = vpop.f32.mrb[9].mxu1 }
 0x11e   : > { %v954_v51 = vpop.f32.mrb[10].mxu0  ;;  %v3049_v52 = vpop.f32.mrb[10].mxu1 }
 0x11f   : > { %v1841_v53 = vadd.f32 %v1840_v44, %v1778_v48  ;;  %v2331_v54 = vpack.c.bf16 %v954_v51, %v951_v45  ;;  %v1709_v55 = vadd.f32 %v1708_v47, %v954_v51  ;;  %v1779_v56 = vmul.f32 %v954_v51, %v954_v51  ;;  %v956_v57 = vpop.f32.mrb[11].mxu0  ;;  %v1084_v58 = vpop.f32.mrb[11].mxu1 }
 0x120   : > { %v2411_v59 = vpack.c.bf16 %v3049_v52, %v3047_v46 }
 0x121   : > { %2479 = vst [vmem:[%s3035_s9 + $0x10] sm:$0xff] %v2331_v54   ;;  %v1842_v60 = vadd.f32 %v1841_v53, %v1779_v56 }
 0x122   : > { %2495 = vst [vmem:[%s3035_s9 + $0x90] sm:$0xff] %v2411_v59  }
 0x124   : > { %v959_v61 = vpop.f32.mrb[12].mxu0  ;;  %v3055_v62 = vpop.f32.mrb[12].mxu1 }
 0x125   : > { %v1710_v63 = vadd.f32 %v1709_v55, %v959_v61  ;;  %v1780_v0 = vmul.f32 %v959_v61, %v959_v61  ;;  %v961_v1 = vpop.f32.mrb[13].mxu0  ;;  %v1089_v2 = vpop.f32.mrb[13].mxu1 }
 0x126   : > { %v962_v3 = vpop.f32.mrb[14].mxu0  ;;  %v3057_v4 = vpop.f32.mrb[14].mxu1 }
 0x127   : > { %v1843_v5 = vadd.f32 %v1842_v60, %v1780_v0  ;;  %v2336_v6 = vpack.c.bf16 %v962_v3, %v959_v61  ;;  %v1711_v7 = vadd.f32 %v1710_v63, %v962_v3  ;;  %v1781_v8 = vmul.f32 %v962_v3, %v962_v3  ;;  %v964_v9 = vpop.f32.mrb[15].mxu0  ;;  %v1092_v10 = vpop.f32.mrb[15].mxu1 }
 0x128   : > { %v2416_v11 = vpack.c.bf16 %v3057_v4, %v3055_v62 }
 0x129   : > { %2480 = vst [vmem:[%s3035_s9 + $0x18] sm:$0xff] %v2336_v6   ;;  %v1844_v12 = vadd.f32 %v1843_v5, %v1781_v8 }
 0x12a   : > { %2496 = vst [vmem:[%s3035_s9 + $0x98] sm:$0xff] %v2416_v11  }
 0x12c   : > { %v967_v13 = vpop.f32.mrb[16].mxu0  ;;  %v3063_v14 = vpop.f32.mrb[16].mxu1 }
 0x12d   : > { %v1712_v15 = vadd.f32 %v1711_v7, %v967_v13  ;;  %v1782_v17 = vmul.f32 %v967_v13, %v967_v13  ;;  %v969_v18 = vpop.f32.mrb[17].mxu0  ;;  %v1097_v19 = vpop.f32.mrb[17].mxu1 }
 0x12e   : > { %v970_v20 = vpop.f32.mrb[18].mxu0  ;;  %v3065_v22 = vpop.f32.mrb[18].mxu1 }
 0x12f   : > { %v1845_v23 = vadd.f32 %v1844_v12, %v1782_v17  ;;  %v2341_v24 = vpack.c.bf16 %v970_v20, %v967_v13  ;;  %v1713_v25 = vadd.f32 %v1712_v15, %v970_v20  ;;  %v1783_v26 = vmul.f32 %v970_v20, %v970_v20  ;;  %v972_v27 = vpop.f32.mrb[19].mxu0  ;;  %v1100_v28 = vpop.f32.mrb[19].mxu1 }
 0x130   : > { %v2421_v29 = vpack.c.bf16 %v3065_v22, %v3063_v14 }
 0x131   : > { %2481 = vst [vmem:[%s3035_s9 + $0x20] sm:$0xff] %v2341_v24   ;;  %v1846_v31 = vadd.f32 %v1845_v23, %v1783_v26 }
 0x132   : > { %2497 = vst [vmem:[%s3035_s9 + $0xa0] sm:$0xff] %v2421_v29  }
 0x134   : > { %v975_v32 = vpop.f32.mrb[20].mxu0  ;;  %v3071_v33 = vpop.f32.mrb[20].mxu1 }
 0x135   : > { %v1714_v34 = vadd.f32 %v1713_v25, %v975_v32  ;;  %v1784_v35 = vmul.f32 %v975_v32, %v975_v32  ;;  %v977_v37 = vpop.f32.mrb[21].mxu0  ;;  %v1105_v38 = vpop.f32.mrb[21].mxu1 }
 0x136   : > { %v978_v39 = vpop.f32.mrb[22].mxu0  ;;  %v3073_v40 = vpop.f32.mrb[22].mxu1 }
 0x137   : > { %v1847_v41 = vadd.f32 %v1846_v31, %v1784_v35  ;;  %v2346_v42 = vpack.c.bf16 %v978_v39, %v975_v32  ;;  %v1715_v43 = vadd.f32 %v1714_v34, %v978_v39  ;;  %v1785_v44 = vmul.f32 %v978_v39, %v978_v39  ;;  %v980_v45 = vpop.f32.mrb[23].mxu0  ;;  %v1108_v47 = vpop.f32.mrb[23].mxu1 }
 0x138   : > { %v2426_v48 = vpack.c.bf16 %v3073_v40, %v3071_v33 }
 0x139   : > { %2482 = vst [vmem:[%s3035_s9 + $0x28] sm:$0xff] %v2346_v42   ;;  %v1848_v49 = vadd.f32 %v1847_v41, %v1785_v44 }
 0x13a   : > { %2498 = vst [vmem:[%s3035_s9 + $0xa8] sm:$0xff] %v2426_v48  }
 0x13c   : > { %v983_v50 = vpop.f32.mrb[24].mxu0  ;;  %v3079_v51 = vpop.f32.mrb[24].mxu1 }
 0x13d   : > { %v1716_v53 = vadd.f32 %v1715_v43, %v983_v50  ;;  %v1786_v54 = vmul.f32 %v983_v50, %v983_v50  ;;  %v985_v55 = vpop.f32.mrb[25].mxu0  ;;  %v1113_v56 = vpop.f32.mrb[25].mxu1 }
 0x13e   : > { %v986_v57 = vpop.f32.mrb[26].mxu0  ;;  %v3081_v58 = vpop.f32.mrb[26].mxu1 }
 0x13f   : > { %v1849_v59 = vadd.f32 %v1848_v49, %v1786_v54  ;;  %v2351_v60 = vpack.c.bf16 %v986_v57, %v983_v50  ;;  %v1717_v61 = vadd.f32 %v1716_v53, %v986_v57  ;;  %v1787_v63 = vmul.f32 %v986_v57, %v986_v57  ;;  %v988_v0 = vpop.f32.mrb[27].mxu0  ;;  %v1116_v1 = vpop.f32.mrb[27].mxu1 }
 0x140   : > { %v2431_v2 = vpack.c.bf16 %v3081_v58, %v3079_v51 }
 0x141   : > { %2483 = vst [vmem:[%s3035_s9 + $0x30] sm:$0xff] %v2351_v60   ;;  %v1850_v3 = vadd.f32 %v1849_v59, %v1787_v63 }
 0x142   : > { %2499 = vst [vmem:[%s3035_s9 + $0xb0] sm:$0xff] %v2431_v2  }
 0x144   : > { %v991_v5 = vpop.f32.mrb[28].mxu0  ;;  %v3087_v6 = vpop.f32.mrb[28].mxu1 }
 0x145   : > { %v1718_v7 = vadd.f32 %v1717_v61, %v991_v5  ;;  %v1788_v8 = vmul.f32 %v991_v5, %v991_v5  ;;  %v993_v9 = vpop.f32.mrb[29].mxu0  ;;  %v1121_v10 = vpop.f32.mrb[29].mxu1 }
 0x146   : > { %v994_v11 = vpop.f32.mrb[30].mxu0  ;;  %v3089_v12 = vpop.f32.mrb[30].mxu1 }
 0x147   : > { %v1851_v13 = vadd.f32 %v1850_v3, %v1788_v8  ;;  %v2356_v15 = vpack.c.bf16 %v994_v11, %v991_v5  ;;  %v1719_v17 = vadd.f32 %v1718_v7, %v994_v11  ;;  %v1789_v18 = vmul.f32 %v994_v11, %v994_v11  ;;  %v996_v19 = vpop.f32.mrb[31].mxu0  ;;  %v1124_v20 = vpop.f32.mrb[31].mxu1 }
 0x148   : > { %v2436_v23 = vpack.c.bf16 %v3089_v12, %v3087_v6 }
 0x149   : > { %2484 = vst [vmem:[%s3035_s9 + $0x38] sm:$0xff] %v2356_v15   ;;  %v1852_v24 = vadd.f32 %v1851_v13, %v1789_v18 }
 0x14a   : > { %2500 = vst [vmem:[%s3035_s9 + $0xb8] sm:$0xff] %v2436_v23  }
 0x14c   : > { %v999_v25 = vpop.f32.mrb[32].mxu0  ;;  %v3095_v26 = vpop.f32.mrb[32].mxu1 }
 0x14d   : > { %v1720_v27 = vadd.f32 %v1719_v17, %v999_v25  ;;  %v1790_v28 = vmul.f32 %v999_v25, %v999_v25  ;;  %v1001_v29 = vpop.f32.mrb[33].mxu0  ;;  %v1129_v31 = vpop.f32.mrb[33].mxu1 }
 0x14e   : > { %v1002_v32 = vpop.f32.mrb[34].mxu0  ;;  %v3097_v34 = vpop.f32.mrb[34].mxu1 }
 0x14f   : > { %v1853_v35 = vadd.f32 %v1852_v24, %v1790_v28  ;;  %v2361_v37 = vpack.c.bf16 %v1002_v32, %v999_v25  ;;  %v1721_v38 = vadd.f32 %v1720_v27, %v1002_v32  ;;  %v1791_v39 = vmul.f32 %v1002_v32, %v1002_v32  ;;  %v1004_v41 = vpop.f32.mrb[35].mxu0  ;;  %v1132_v42 = vpop.f32.mrb[35].mxu1 }
 0x150   : > { %v2441_v43 = vpack.c.bf16 %v3097_v34, %v3095_v26 }
 0x151   : > { %2485 = vst [vmem:[%s3035_s9 + $0x40] sm:$0xff] %v2361_v37   ;;  %v1854_v44 = vadd.f32 %v1853_v35, %v1791_v39 }
 0x152   : > { %2501 = vst [vmem:[%s3035_s9 + $0xc0] sm:$0xff] %v2441_v43  }
 0x154   : > { %v1007_v45 = vpop.f32.mrb[36].mxu0  ;;  %v3103_v47 = vpop.f32.mrb[36].mxu1 }
 0x155   : > { %v1722_v48 = vadd.f32 %v1721_v38, %v1007_v45  ;;  %v1792_v49 = vmul.f32 %v1007_v45, %v1007_v45  ;;  %v1009_v50 = vpop.f32.mrb[37].mxu0  ;;  %v1137_v53 = vpop.f32.mrb[37].mxu1 }
 0x156   : > { %v1010_v54 = vpop.f32.mrb[38].mxu0  ;;  %v3105_v55 = vpop.f32.mrb[38].mxu1 }
 0x157   : > { %v1855_v56 = vadd.f32 %v1854_v44, %v1792_v49  ;;  %v2366_v57 = vpack.c.bf16 %v1010_v54, %v1007_v45  ;;  %v1723_v59 = vadd.f32 %v1722_v48, %v1010_v54  ;;  %v1793_v60 = vmul.f32 %v1010_v54, %v1010_v54  ;;  %v1012_v61 = vpop.f32.mrb[39].mxu0  ;;  %v1140_v63 = vpop.f32.mrb[39].mxu1 }
 0x158   : > { %v2446_v0 = vpack.c.bf16 %v3105_v55, %v3103_v47 }
 0x159   : > { %2486 = vst [vmem:[%s3035_s9 + $0x48] sm:$0xff] %v2366_v57   ;;  %v1856_v1 = vadd.f32 %v1855_v56, %v1793_v60 }
 0x15a   : > { %2502 = vst [vmem:[%s3035_s9 + $0xc8] sm:$0xff] %v2446_v0  }
 0x15c   : > { %v1015_v2 = vpop.f32.mrb[40].mxu0  ;;  %v3111_v3 = vpop.f32.mrb[40].mxu1 }
 0x15d   : > { %v1724_v5 = vadd.f32 %v1723_v59, %v1015_v2  ;;  %v1794_v7 = vmul.f32 %v1015_v2, %v1015_v2  ;;  %v1017_v8 = vpop.f32.mrb[41].mxu0  ;;  %v1145_v9 = vpop.f32.mrb[41].mxu1 }
 0x15e   : > { %v1018_v10 = vpop.f32.mrb[42].mxu0  ;;  %v3113_v11 = vpop.f32.mrb[42].mxu1 }
 0x15f   : > { %v1857_v13 = vadd.f32 %v1856_v1, %v1794_v7  ;;  %v2371_v15 = vpack.c.bf16 %v1018_v10, %v1015_v2  ;;  %v1725_v17 = vadd.f32 %v1724_v5, %v1018_v10  ;;  %v1795_v18 = vmul.f32 %v1018_v10, %v1018_v10  ;;  %v1020_v19 = vpop.f32.mrb[43].mxu0  ;;  %v1148_v20 = vpop.f32.mrb[43].mxu1 }
 0x160   : > { %v2451_v23 = vpack.c.bf16 %v3113_v11, %v3111_v3 }
 0x161   : > { %2487 = vst [vmem:[%s3035_s9 + $0x50] sm:$0xff] %v2371_v15   ;;  %v1858_v24 = vadd.f32 %v1857_v13, %v1795_v18 }
 0x162   : > { %2503 = vst [vmem:[%s3035_s9 + $0xd0] sm:$0xff] %v2451_v23  }
 0x164   : > { %v1023_v25 = vpop.f32.mrb[44].mxu0  ;;  %v3119_v27 = vpop.f32.mrb[44].mxu1 }
 0x165   : > { %v1726_v28 = vadd.f32 %v1725_v17, %v1023_v25  ;;  %v1796_v29 = vmul.f32 %v1023_v25, %v1023_v25  ;;  %v1025_v31 = vpop.f32.mrb[45].mxu0  ;;  %v1153_v32 = vpop.f32.mrb[45].mxu1 }
 0x166   : > { %v1026_v35 = vpop.f32.mrb[46].mxu0  ;;  %v3121_v37 = vpop.f32.mrb[46].mxu1 }
 0x167   : > { %v1859_v38 = vadd.f32 %v1858_v24, %v1796_v29  ;;  %v2376_v39 = vpack.c.bf16 %v1026_v35, %v1023_v25  ;;  %v1727_v41 = vadd.f32 %v1726_v28, %v1026_v35  ;;  %v1797_v42 = vmul.f32 %v1026_v35, %v1026_v35  ;;  %v1028_v43 = vpop.f32.mrb[47].mxu0  ;;  %v1156_v44 = vpop.f32.mrb[47].mxu1 }
 0x168   : > { %v2456_v45 = vpack.c.bf16 %v3121_v37, %v3119_v27 }
 0x169   : > { %2488 = vst [vmem:[%s3035_s9 + $0x58] sm:$0xff] %v2376_v39   ;;  %v1860_v48 = vadd.f32 %v1859_v38, %v1797_v42 }
 0x16a   : > { %2504 = vst [vmem:[%s3035_s9 + $0xd8] sm:$0xff] %v2456_v45  }
 0x16c   : > { %v1031_v49 = vpop.f32.mrb[48].mxu0  ;;  %v3127_v50 = vpop.f32.mrb[48].mxu1 }
 0x16d   : > { %v1728_v53 = vadd.f32 %v1727_v41, %v1031_v49  ;;  %v1798_v54 = vmul.f32 %v1031_v49, %v1031_v49  ;;  %v1033_v56 = vpop.f32.mrb[49].mxu0  ;;  %v1161_v57 = vpop.f32.mrb[49].mxu1 }
 0x16e   : > { %v1034_v59 = vpop.f32.mrb[50].mxu0  ;;  %v3129_v60 = vpop.f32.mrb[50].mxu1 }
 0x16f   : > { %v1861_v61 = vadd.f32 %v1860_v48, %v1798_v54  ;;  %v2381_v63 = vpack.c.bf16 %v1034_v59, %v1031_v49  ;;  %v1729_v0 = vadd.f32 %v1728_v53, %v1034_v59  ;;  %v1799_v1 = vmul.f32 %v1034_v59, %v1034_v59  ;;  %v1036_v2 = vpop.f32.mrb[51].mxu0  ;;  %v1164_v5 = vpop.f32.mrb[51].mxu1 }
 0x170   : > { %v2461_v7 = vpack.c.bf16 %v3129_v60, %v3127_v50 }
 0x171   : > { %2489 = vst [vmem:[%s3035_s9 + $0x60] sm:$0xff] %v2381_v63   ;;  %v1862_v8 = vadd.f32 %v1861_v61, %v1799_v1 }
 0x172   : > { %2505 = vst [vmem:[%s3035_s9 + $0xe0] sm:$0xff] %v2461_v7  }
 0x174   : > { %v1039_v9 = vpop.f32.mrb[52].mxu0  ;;  %v3135_v10 = vpop.f32.mrb[52].mxu1 }
 0x175   : > { %v1730_v13 = vadd.f32 %v1729_v0, %v1039_v9  ;;  %v1800_v15 = vmul.f32 %v1039_v9, %v1039_v9  ;;  %v1041_v17 = vpop.f32.mrb[53].mxu0  ;;  %v1169_v18 = vpop.f32.mrb[53].mxu1 }
 0x176   : > { %v1042_v19 = vpop.f32.mrb[54].mxu0  ;;  %v3137_v20 = vpop.f32.mrb[54].mxu1 }
 0x177   : > { %v1863_v23 = vadd.f32 %v1862_v8, %v1800_v15  ;;  %v2386_v24 = vpack.c.bf16 %v1042_v19, %v1039_v9  ;;  %v1731_v25 = vadd.f32 %v1730_v13, %v1042_v19  ;;  %v1801_v28 = vmul.f32 %v1042_v19, %v1042_v19  ;;  %v1044_v29 = vpop.f32.mrb[55].mxu0  ;;  %v1172_v31 = vpop.f32.mrb[55].mxu1 }
 0x178   : > { %v2466_v32 = vpack.c.bf16 %v3137_v20, %v3135_v10 }
 0x179   : > { %2490 = vst [vmem:[%s3035_s9 + $0x68] sm:$0xff] %v2386_v24   ;;  %v1864_v35 = vadd.f32 %v1863_v23, %v1801_v28  ;;  %v1806_v28 = vmul.f32 %v3029_v16, %v3029_v16 }
 0x17a   : > { %2506 = vst [vmem:[%s3035_s9 + $0xe8] sm:$0xff] %v2466_v32   ;;  %v1807_v32 = vmul.f32 %v3031_v21, %v3031_v21 }
 0x17c   : > { %v1047_v38 = vpop.f32.mrb[56].mxu0  ;;  %v3143_v39 = vpop.f32.mrb[56].mxu1 }
 0x17d   : > { %v1732_v41 = vadd.f32 %v1731_v25, %v1047_v38  ;;  %v1802_v42 = vmul.f32 %v1047_v38, %v1047_v38  ;;  %v1049_v43 = vpop.f32.mrb[57].mxu0  ;;  %v1177_v44 = vpop.f32.mrb[57].mxu1 }
 0x17e   : > { %v1050_v45 = vpop.f32.mrb[58].mxu0  ;;  %v3145_v48 = vpop.f32.mrb[58].mxu1 }
 0x17f   : > { %v1865_v49 = vadd.f32 %v1864_v35, %v1802_v42  ;;  %v2391_v53 = vpack.c.bf16 %v1050_v45, %v1047_v38  ;;  %v1733_v54 = vadd.f32 %v1732_v41, %v1050_v45  ;;  %v1803_v56 = vmul.f32 %v1050_v45, %v1050_v45  ;;  %v1052_v57 = vpop.f32.mrb[59].mxu0  ;;  %v1180_v59 = vpop.f32.mrb[59].mxu1 }
 0x180   : > { %v2471_v61 = vpack.c.bf16 %v3145_v48, %v3143_v39 }
 0x181   : > { %2491 = vst [vmem:[%s3035_s9 + $0x70] sm:$0xff] %v2391_v53   ;;  %v1866_v63 = vadd.f32 %v1865_v49, %v1803_v56 }
 0x182   : > { %2507 = vst [vmem:[%s3035_s9 + $0xf0] sm:$0xff] %v2471_v61  }
 0x184   : > { %v1055_v0 = vpop.f32.mrb[60].mxu0  ;;  %v3151_v1 = vpop.f32.mrb[60].mxu1 }
 0x185   : > { %v1734_v2 = vadd.f32 %v1733_v54, %v1055_v0  ;;  %v1804_v5 = vmul.f32 %v1055_v0, %v1055_v0  ;;  %v1057_v7 = vpop.f32.mrb[61].mxu0  ;;  %v1185_v8 = vpop.f32.mrb[61].mxu1 }
 0x186   : > { %v1058_v9 = vpop.f32.mrb[62].mxu0  ;;  %v3155_v13 = vpop.f32.mrb[62].mxu1 }
 0x187   : > { %v1867_v15 = vadd.f32 %v1866_v63, %v1804_v5  ;;  %v2396_v17 = vpack.c.bf16 %v1058_v9, %v1055_v0  ;;  %v1735_v18 = vadd.f32 %v1734_v2, %v1058_v9  ;;  %v1805_v19 = vmul.f32 %v1058_v9, %v1058_v9  ;;  %v1060_v23 = vpop.f32.mrb[63].mxu0  ;;  %v1188_v24 = vpop.f32.mrb[63].mxu1 }
 0x188   : > { %v2476_v25 = vpack.c.bf16 %v3155_v13, %v3151_v1 }
 0x189   : > { %2492 = vst [vmem:[%s3035_s9 + $0x78] sm:$0xff] %v2396_v17   ;;  %v1736_v29 = vadd.f32 %v1735_v18, %v3029_v16  ;;  %v1868_v31 = vadd.f32 %v1867_v15, %v1805_v19 }
 0x18a   : > { %2508 = vst [vmem:[%s3035_s9 + $0xf8] sm:$0xff] %v2476_v25  }
 0x18b   : > { %v1737_v35 = vadd.f32 %v1736_v29, %v3031_v21  ;;  %v1869_v38 = vadd.f32 %v1868_v31, %v1806_v28 }
 0x18c   : > { %2712 = shalt.err (!%p2709_p5)
}
 0x18d   : > { %s2713_s30 = scalar_lea.hbm %s3160_s21, 4096  ;;  %s2717_s6 = scalar_lea.hbm %s3344_s2, 16384 }
 0x18e   : > { %p2714_p6 = scmp.ne.s32.totalorder %s3160_s21, %s2713_s30  ;;  %p2718_p10 = scmp.lt.u32.totalorder %s3160_s21, %s3344_s2 }
 0x18f   : > { %p2719_p11 = scmp.lt.u32.totalorder %s2717_s6, %s2713_s30  ;;  %p2721_p13 = scmp.lt.u32.totalorder %s2713_s30, %s3160_s21 }
 0x190   : > { %p2715_p7 = pnand %p2714_p6, %p2877_p4 }
 0x191   : > { %p2720_p12 = por %p2719_p11, %p2718_p10 }
 0x192   : > { %p2716_p9 = pneg %p2715_p7 }
 0x193   : > { %p2722_p0 = por %p2721_p13, %p2720_p12 }
 0x195   : > { %p2723_p1 = pnand %p2722_p0, %p2716_p9 }
 0x197   : > { %2726 = shalt.err (!%p2723_p1)
}
 0x198   : > { %s2814_s10 = smov 64   ;;  %s2815_s18 = smov 4   ;;  %v1808_v16 = vmul.f32 %v3039_v30, %v3039_v30  ;;  %v1738_v21 = vadd.f32 %v1737_v35, %v3039_v30  ;;  %v1870_v41 = vadd.f32 %v1869_v38, %v1807_v32  ;;  %v1809_v42 = vmul.f32 %v3041_v36, %v3041_v36 }
 0x199   : > { %2529 = dma.vmem_to_hbm [thread:$0]  (%p2877_p4), %s3162_s11, 4096, %s3160_s21, %s1910_s23, %s2814_s10, %s2814_s10, %s2815_s18   ;;  %v1810_v45 = vmul.f32 %v3047_v46, %v3047_v46  ;;  %v1811_v54 = vmul.f32 %v3049_v52, %v3049_v52  ;;  %v1812_v30 = vmul.f32 %v3055_v62, %v3055_v62  ;;  %v1822_v35 = vmul.f32 %v3095_v26, %v3095_v26 }
 0x19a   : > { %v1739_v43 = vadd.f32 %v1738_v21, %v3041_v36  ;;  %v1871_v44 = vadd.f32 %v1870_v41, %v1808_v16  ;;  %v1813_v36 = vmul.f32 %v3057_v4, %v3057_v4  ;;  %v1823_v21 = vmul.f32 %v3097_v34, %v3097_v34  ;;  %s2071_s11 = sshll.u32 %s3026_s7, 1  ;;  %s2249_s19 = sshll.u32 %s2801_s15, 5 }
 0x19b   : > { %s216_s21 = scalar_lea.vmem [#allocation5], %s2071_s11  ;;  %s3293_s28 = scalar_lea.hbm %s3345_s3, %s2249_s19 }
 0x19c   : > { %v1740_v49 = vadd.f32 %v1739_v43, %v3047_v46  ;;  %v1872_v53 = vadd.f32 %v1871_v44, %v1809_v42  ;;  %v1814_v46 = vmul.f32 %v3063_v14, %v3063_v14  ;;  %v1824_v42 = vmul.f32 %v3103_v47, %v3103_v47  ;;  %s1944_s23 = sshll.u32 %s216_s21, 4  ;;  %s1915_s29 = scalar_lea.sflag [#allocation6], %s3026_s7  ;;  %s3295_s23 = int_to_ptr.vmem [resolvable:$true] %s1944_s23 }
 0x19d   : > { %v1825_v44 = vmul.f32 %v3105_v55, %v3105_v55  ;;  %s2727_s30 = scalar_lea.vmem %s3295_s23, 32  ;;  %s2816_s15 = smov [#allocation5]  }
 0x19e   : > { %v1741_v56 = vadd.f32 %v1740_v49, %v3049_v52  ;;  %v1873_v57 = vadd.f32 %v1872_v53, %v1810_v45  ;;  %v1815_v52 = vmul.f32 %v3065_v22, %v3065_v22  ;;  %v1826_v49 = vmul.f32 %v3111_v3, %v3111_v3  ;;  %p2728_p2 = scmp.ne.s32.totalorder %s3295_s23, %s2727_s30  ;;  %s2731_s4 = sshll.u32 %s2816_s15, 4  ;;  %s2732_s4 = int_to_ptr.vmem [resolvable:$false] %s2731_s4 }
 0x19f   : > { %s2733_s5 = scalar_lea.vmem %s2732_s4, 64  ;;  %p2734_p6 = scmp.lt.s32.totalorder %s3295_s23, %s2732_s4 }
 0x1a0   : > { %v1742_v59 = vadd.f32 %v1741_v56, %v3055_v62  ;;  %v1874_v61 = vadd.f32 %v1873_v57, %v1811_v54  ;;  %v1816_v62 = vmul.f32 %v3071_v33, %v3071_v33  ;;  %v1827_v54 = vmul.f32 %v3113_v11, %v3113_v11  ;;  %p2729_p3 = pnand %p2728_p2, %p2877_p4  ;;  %p2735_p7 = scmp.lt.s32.totalorder %s2733_s5, %s2727_s30 }
 0x1a1   : > { %v1828_v57 = vmul.f32 %v3119_v27, %v3119_v27 }
 0x1a2   : > { %v1743_v63 = vadd.f32 %v1742_v59, %v3057_v4  ;;  %v1875_v0 = vadd.f32 %v1874_v61, %v1812_v30  ;;  %v1817_v4 = vmul.f32 %v3073_v40, %v3073_v40  ;;  %v1829_v59 = vmul.f32 %v3121_v37, %v3121_v37  ;;  %p2730_p5 = pneg %p2729_p3  ;;  %p2736_p9 = por %p2735_p7, %p2734_p6 }
 0x1a4   : > { %v1876_v2 = vadd.f32 %v1875_v0, %v1813_v36  ;;  %v1744_v5 = vadd.f32 %v1743_v63, %v3063_v14  ;;  %v1818_v14 = vmul.f32 %v3079_v51, %v3079_v51  ;;  %v1830_v36 = vmul.f32 %v3127_v50, %v3127_v50  ;;  %p2737_p10 = pnand %p2736_p9, %p2730_p5 }
 0x1a5   : > { %v1831_v0 = vmul.f32 %v3129_v60, %v3129_v60 }
 0x1a6   : > { %v1745_v7 = vadd.f32 %v1744_v5, %v3065_v22  ;;  %v1877_v8 = vadd.f32 %v1876_v2, %v1814_v46  ;;  %v1819_v22 = vmul.f32 %v3081_v58, %v3081_v58  ;;  %v1832_v2 = vmul.f32 %v3135_v10, %v3135_v10 }
 0x1a8   : > { %v1746_v9 = vadd.f32 %v1745_v7, %v3071_v33  ;;  %v1878_v15 = vadd.f32 %v1877_v8, %v1815_v52  ;;  %v1820_v33 = vmul.f32 %v3087_v6, %v3087_v6  ;;  %v1833_v52 = vmul.f32 %v3137_v20, %v3137_v20 }
 0x1a9   : > { %v1834_v8 = vmul.f32 %v3143_v39, %v3143_v39 }
 0x1aa   : > { %v1747_v17 = vadd.f32 %v1746_v9, %v3073_v40  ;;  %v1879_v18 = vadd.f32 %v1878_v15, %v1816_v62  ;;  %v1821_v40 = vmul.f32 %v3089_v12, %v3089_v12  ;;  %v1835_v9 = vmul.f32 %v3145_v48, %v3145_v48 }
 0x1ac   : > { %v1748_v19 = vadd.f32 %v1747_v17, %v3079_v51  ;;  %v1880_v23 = vadd.f32 %v1879_v18, %v1817_v4 }
 0x1ae   : > { %v1749_v24 = vadd.f32 %v1748_v19, %v3081_v58  ;;  %v1881_v25 = vadd.f32 %v1880_v23, %v1818_v14 }
 0x1b0   : > { %v1750_v28 = vadd.f32 %v1749_v24, %v3087_v6  ;;  %v1882_v29 = vadd.f32 %v1881_v25, %v1819_v22 }
 0x1b2   : > { %v1751_v31 = vadd.f32 %v1750_v28, %v3089_v12  ;;  %v1883_v32 = vadd.f32 %v1882_v29, %v1820_v33 }
 0x1b4   : > { %v1752_v51 = vadd.f32 %v1751_v31, %v3095_v26  ;;  %v1884_v38 = vadd.f32 %v1883_v32, %v1821_v40 }
 0x1b6   : > { %v1885_v58 = vadd.f32 %v1884_v38, %v1822_v35  ;;  %v1753_v16 = vadd.f32 %v1752_v51, %v3097_v34 }
 0x1b8   : > { %v1886_v6 = vadd.f32 %v1885_v58, %v1823_v21  ;;  %v1754_v41 = vadd.f32 %v1753_v16, %v3103_v47 }
 0x1ba   : > { %v1887_v12 = vadd.f32 %v1886_v6, %v1824_v42  ;;  %v1755_v43 = vadd.f32 %v1754_v41, %v3105_v55 }
 0x1bc   : > { %v1888_v26 = vadd.f32 %v1887_v12, %v1825_v44  ;;  %v1756_v45 = vadd.f32 %v1755_v43, %v3111_v3 }
 0x1be   : > { %v1889_v53 = vadd.f32 %v1888_v26, %v1826_v49  ;;  %v1757_v34 = vadd.f32 %v1756_v45, %v3113_v11 }
 0x1c0   : > { %v1890_v56 = vadd.f32 %v1889_v53, %v1827_v54  ;;  %v1758_v47 = vadd.f32 %v1757_v34, %v3119_v27 }
 0x1c2   : > { %v1891_v30 = vadd.f32 %v1890_v56, %v1828_v57  ;;  %v1759_v55 = vadd.f32 %v1758_v47, %v3121_v37 }
 0x1c4   : > { %v1892_v61 = vadd.f32 %v1891_v30, %v1829_v59  ;;  %v1760_v3 = vadd.f32 %v1759_v55, %v3127_v50 }
 0x1c6   : > { %v1893_v63 = vadd.f32 %v1892_v61, %v1830_v36  ;;  %v1761_v11 = vadd.f32 %v1760_v3, %v3129_v60 }
 0x1c8   : > { %v1894_v46 = vadd.f32 %v1893_v63, %v1831_v0  ;;  %v1762_v27 = vadd.f32 %v1761_v11, %v3135_v10  ;;  %v1836_v10 = vmul.f32 %v3151_v1, %v3151_v1 }
 0x1ca   : > { %v1895_v5 = vadd.f32 %v1894_v46, %v1832_v2  ;;  %v1763_v37 = vadd.f32 %v1762_v27, %v3137_v20 }
 0x1cc   : > { %v1896_v7 = vadd.f32 %v1895_v5, %v1833_v52  ;;  %v1764_v50 = vadd.f32 %v1763_v37, %v3143_v39  ;;  %v1837_v39 = vmul.f32 %v3155_v13, %v3155_v13 }
 0x1ce   : > { %v1897_v60 = vadd.f32 %v1896_v7, %v1834_v8  ;;  %v1765_v62 = vadd.f32 %v1764_v50, %v3145_v48 }
 0x1d0   : > { %v1898_v15 = vadd.f32 %v1897_v60, %v1835_v9  ;;  %v1766_v4 = vadd.f32 %v1765_v62, %v3151_v1 }
 0x1d2   : > { %v1899_v20 = vadd.f32 %v1898_v15, %v1836_v10  ;;  %v1767_v17 = vadd.f32 %v1766_v4, %v3155_v13 }
 0x1d4   : > { %v1768_v18 = vrot.slane %v1767_v17, 4  ;;  %v1900_v14 = vadd.f32 %v1899_v20, %v1837_v39 }
 0x1d6   : > { %v1769_v19 = vadd.f32 %v1768_v18, %v1767_v17  ;;  %v1901_v23 = vrot.slane %v1900_v14, 4 }
 0x1d8   : > { %v1770_v22 = vrot.slane %v1769_v19, 2  ;;  %v1902_v24 = vadd.f32 %v1901_v23, %v1900_v14 }
 0x1da   : > { %v1771_v48 = vadd.f32 %v1770_v22, %v1769_v19  ;;  %v1903_v25 = vrot.slane %v1902_v24, 2 }
 0x1dc   : > { %v1772_v33 = vrot.slane %v1771_v48, 1  ;;  %v1904_v1 = vadd.f32 %v1903_v25, %v1902_v24 }
 0x1de   : > { %v1905_v28 = vrot.slane %v1904_v1, 1  ;;  %v1773_v29 = vadd.f32 %v1772_v33, %v1771_v48 }
 0x1e0   : > { %v1906_v40 = vadd.f32 %v1905_v28, %v1904_v1 }
 0x1e2   : > { %v1907_v13 = vsel %vm894_vm1, %v1773_v29, %v1906_v40 }
 0x1e3   : > { %1908 = vst [vmem:[%s216_s21] sm:$0x3] %v1907_v13 }
 0x1e4   : > { %2740 = shalt.err (!%p2737_p10)
}
 0x1e5   : > { %s2741_s7 = scalar_lea.hbm %s3293_s28, 32  ;;  %s2745_s9 = scalar_lea.hbm %s3345_s3, 128 }
 0x1e6   : > { %p2742_p11 = scmp.ne.s32.totalorder %s3293_s28, %s2741_s7  ;;  %p2746_p0 = scmp.lt.u32.totalorder %s3293_s28, %s3345_s3 }
 0x1e7   : > { %p2747_p1 = scmp.lt.u32.totalorder %s2745_s9, %s2741_s7  ;;  %p2749_p3 = scmp.lt.u32.totalorder %s2741_s7, %s3293_s28 }
 0x1e8   : > { %p2743_p12 = pnand %p2742_p11, %p2877_p4 }
 0x1e9   : > { %p2748_p2 = por %p2747_p1, %p2746_p0 }
 0x1ea   : > { %p2744_p13 = pneg %p2743_p12 }
 0x1eb   : > { %p2750_p5 = por %p2749_p3, %p2748_p2 }
 0x1ed   : > { %p2751_p6 = pnand %p2750_p5, %p2744_p13 }
 0x1ef   : > { %2754 = shalt.err (!%p2751_p6)
}
 0x1f0   : > { %2530 = dma.vmem_to_hbm [thread:$0]  (%p2877_p4), %s3295_s23, 32, %s3293_s28, %s1915_s29  }
 0x1f1 PF: > { %p2540_p7 = scmp.ge.s32.totalorder %s2809_s17, 2  ;;  %s1956_s11 = sand.u32 1, %s2789_s12  }
 0x1f2   : > { %s1957_s19 = scalar_lea.sflag [#allocation4], %s1956_s11 }
 0x1f3   : > { %p2534_p9 = pnand %p2540_p7, %p2884_p8 }
 0x1f5   : > { %2780 = dma.done.wait (!%p2534_p9), %s1957_s19, 4096  }
 0x1f6   : > { %2782 = vsyncadd (!%p2534_p9), %s1957_s19, 4294963200  ;;  %s1966_s21 = scalar_lea.sflag [#allocation6], %s1956_s11 }
 0x1f7   : > { %2784 = dma.done.wait (!%p2534_p9), %s1966_s21, 32  }
 0x1f8   : > { %2786 = vsyncadd (!%p2534_p9), %s1966_s21, 4294967264  ;;  %s20_s17 = sadd.s32 1, %s2809_s17   ;;  %s3348_s12 = smov %s2793_s13 }
 0x1f9   : > { %p17_p10 = scmp.ge.s32.totalorder %s20_s17, 6   ;;  %s3349_s13 = smov %s2797_s14 }
 0x1fa   : > { %s3350_s14 = smov %s2890_s25  ;;  %s3351_s15 = smov %s2805_s16 }
 0x1fb   : > { %s3352_s16 = smov %s3354_s20  ;;  %19 = sbr.rel (!%p17_p10) target bundleno = 6 (0x6), region = 91 }
 0x202   :  { %1971 = vsyncpa [#allocation4], 1 }
 0x203   :  { %1973 = vsyncpa [#allocation4 + $0x1], 1 }
 0x204   :  { %1974 = vsyncpa [#allocation6], 1 }
 0x205   :  { %1976 = vsyncpa [#allocation6 + $0x1], 1 }

</bundles_post_ra>
